<compile_context>
chip_gen: v7x
topology: tpu7x:2x2x1
jax: 0.10.0
libtpu: 0.0.40
codegen_flags: <defaults>
</compile_context>

<pallas_src>
import jax
import jax.numpy as jnp
import numpy as np
from jax.experimental import pallas as pl
from jax.experimental.pallas import tpu as pltpu

EPS = 1e-3            # EfficientNet BatchNorm eps
C_STEM = 32           # stem / depthwise channel width (efficientnet-b0)
C_SE = 8              # squeeze-excite hidden width
C_OUT = 16            # MBConv0 projection width
VMEM_LIMIT = 32 * 1024 * 1024  # safe scoped-VMEM budget on v5e/v6e/v7x


# ----------------------------------------------------------------------------
# Fused kernel: stem conv(+BN+SiLU) -> depthwise 3x3(+BN+SiLU) -> SE ->
# 1x1 projection(+BN).  One image per grid step, all intermediates in VMEM,
# activations lane-packed as (OH, OW*C).
# ----------------------------------------------------------------------------
def _fused_backbone_kernel(patches_ref, stem_bd_ref, stem_b_ref, dww_ref,
                           dwb_ref, poolp_ref, w1_ref, b1_ref, w2_ref, b2_ref,
                           bcastp_ref, projbd_ref, projb_ref, o_ref, colp_ref):
    oh = o_ref.shape[1]
    lp = patches_ref.shape[2]            # OW * C_STEM (lane-packed width)
    ow = lp // C_STEM

    patches = patches_ref[0]             # (OH, OW*C_STEM), K padded to 32

    # zero the H-halo rows of the scratch (re-done every image; cheap)
    zrow = jnp.zeros((1, lp), jnp.float32)
    colp_ref[0:1, :] = zrow
    colp_ref[oh + 1:oh + 2, :] = zrow

    # Depthwise 3x3 accumulation.  The W-shift of each tap column is folded
    # offline into a shifted block-diagonal stem weight, so each dw tap column
    # is one packed stem matmul; the dh taps are sublane-sliced reads of the
    # zero-haloed scratch.  (No lane shifts anywhere.)
    acc = jnp.zeros((oh, lp), jnp.float32)
    for dw in range(3):
        col = jnp.dot(patches, stem_bd_ref[dw],
                      preferred_element_type=jnp.float32) + stem_b_ref[dw]
        col = col * jax.nn.sigmoid(col)                      # stem SiLU
        colp_ref[1:oh + 1, :] = col
        for dh in range(3):
            r = dh * 3 + dw
            acc = acc + colp_ref[dh:dh + oh, :] * dww_ref[r:r + 1, :]
    yd = acc + dwb_ref[...]
    yd = yd * jax.nn.sigmoid(yd)                             # depthwise SiLU

    # squeeze-and-excite: global average pool (packed -> per-channel via a
    # structured matmul), tiny MLP, broadcast back to the packed layout.
    pooled = jnp.dot(jnp.sum(yd, axis=0, keepdims=True), poolp_ref[...],
                     preferred_element_type=jnp.float32) * (1.0 / (oh * ow))
    h = jnp.dot(pooled, w1_ref[...],
                preferred_element_type=jnp.float32) + b1_ref[...]
    h = h * jax.nn.sigmoid(h)
    s = jax.nn.sigmoid(jnp.dot(h, w2_ref[...],
                               preferred_element_type=jnp.float32) + b2_ref[...])
    s_pk = jnp.dot(s, bcastp_ref[...],
                   preferred_element_type=jnp.float32)       # (1, lp)

    # 1x1 projection (BN folded) directly in packed layout (block-diag weight)
    out = jnp.dot(yd * s_pk, projbd_ref[...],
                  preferred_element_type=jnp.float32) + projb_ref[...]
    o_ref[0] = out.astype(o_ref.dtype)                       # (OH, OW*C_OUT)


# ----------------------------------------------------------------------------
# Glue (plain JAX): layout, im2col, BN folding, lane-dense parameter packing
# ----------------------------------------------------------------------------
def im2col(x, k, s):
    """x: (N, H, W, C) -> (N, OH, OW, k*k*C), flattened (kh, kw, cin)."""
    N, H, W, C = x.shape
    OH = (H - k) // s + 1
    OW = (W - k) // s + 1
    idx_h = (jnp.arange(OH) * s)[:, None] + jnp.arange(k)[None, :]
    idx_w = (jnp.arange(OW) * s)[:, None] + jnp.arange(k)[None, :]
    p = x[:, idx_h]                # (N, OH, k, W, C)
    p = p[:, :, :, idx_w]          # (N, OH, k, OW, k, C)
    p = p.transpose(0, 1, 3, 2, 4, 5).reshape(N, OH, OW, k * k * C)
    return p, OH, OW


def bn_fold(gamma, beta):
    # synthetic running stats: mean=0, var=1.  NOTE: with real running stats
    # the bias would also need  beta - mean * scale.
    scale = gamma / jnp.sqrt(1.0 + EPS)
    return scale.reshape(1, -1), beta.reshape(1, -1)


def init_params(key):
    ks = jax.random.split(key, 5)
    p = {}
    # stem: Conv2d(3, 32, 3, stride=2, bias=False) -> HWIO
    p["stem_w"] = jax.random.normal(ks[0], (3, 3, 3, C_STEM), jnp.float32) * 0.1
    p["stem_gamma"] = 1.0 + 0.01 * jnp.arange(C_STEM, dtype=jnp.float32)
    p["stem_beta"] = 0.01 * jnp.arange(C_STEM, dtype=jnp.float32)
    # MBConv0 depthwise: Conv2d(32, 32, 3, groups=32, bias=False) -> HWC
    p["dw_w"] = jax.random.normal(ks[1], (3, 3, C_STEM), jnp.float32) * 0.1
    p["dw_gamma"] = 1.0 - 0.005 * jnp.arange(C_STEM, dtype=jnp.float32)
    p["dw_beta"] = -0.01 * jnp.arange(C_STEM, dtype=jnp.float32)
    # squeeze-and-excite: 32 -> 8 -> 32
    p["se_w1"] = jax.random.normal(ks[2], (C_STEM, C_SE), jnp.float32) * 0.1
    p["se_b1"] = jnp.zeros((1, C_SE), jnp.float32)
    p["se_w2"] = jax.random.normal(ks[3], (C_SE, C_STEM), jnp.float32) * 0.1
    p["se_b2"] = jnp.zeros((1, C_STEM), jnp.float32)
    # project: Conv2d(32, 16, 1, bias=False)
    p["proj_w"] = jax.random.normal(ks[4], (C_STEM, C_OUT), jnp.float32) * 0.1
    p["proj_gamma"] = jnp.ones((C_OUT,), jnp.float32)
    p["proj_beta"] = jnp.zeros((C_OUT,), jnp.float32)
    return p


def pack_params(p, ow):
    """One-time offline: fold BN into weights and pre-pack everything into the
    lane-dense (OW*C) layout used by the fused kernel."""
    fp = {}
    eye_c = jnp.eye(C_STEM, dtype=jnp.float32)

    # stem conv (3,3,3,32) HWIO -> (27,32), K zero-padded to 32, BN folded.
    sc_s, _ = bn_fold(p["stem_gamma"], p["stem_beta"])
    w_stem = (p["stem_w"] * sc_s.reshape(1, 1, 1, -1)).reshape(27, C_STEM)
    w_stem = jnp.pad(w_stem, ((0, C_STEM - 27), (0, 0)))        # (32, 32)
    b_stem = p["stem_beta"].reshape(1, C_STEM)
    # three W-shifted block-diagonal stem weights: column block w of BD[dw]
    # produces the stem output at spatial column w + (dw - 1) (zero if OOB).
    bds, bbs = [], []
    for dw in range(3):
        shift_eye = jnp.eye(ow, k=1 - dw, dtype=jnp.float32)
        bds.append(jnp.kron(shift_eye, w_stem))                 # (OW*32, OW*32)
        valid = jnp.sum(shift_eye, axis=0).reshape(1, ow)       # 1 where in range
        bbs.append(jnp.kron(valid, b_stem))                     # (1, OW*32)
    fp["stem_bd"] = jnp.stack(bds)                              # (3, LP, LP)
    fp["stem_b"] = jnp.stack(bbs)                               # (3, 1, LP)

    # depthwise: BN folded, tiled across the packed W blocks.
    sc_d, _ = bn_fold(p["dw_gamma"], p["dw_beta"])
    w_dw = (p["dw_w"] * sc_d.reshape(1, 1, -1)).reshape(9, C_STEM)
    fp["dw_w"] = jnp.tile(w_dw, (1, ow))                        # (9, LP)
    fp["dw_b"] = jnp.tile(p["dw_beta"].reshape(1, C_STEM), (1, ow))

    # SE pooling / broadcast structured matrices (packed <-> per-channel).
    fp["pool_p"] = jnp.tile(eye_c, (ow, 1))                     # (LP, 32)
    fp["bcast_p"] = jnp.tile(eye_c, (1, ow))                    # (32, LP)
    fp["se_w1"], fp["se_b1"] = p["se_w1"], p["se_b1"]
    fp["se_w2"], fp["se_b2"] = p["se_w2"], p["se_b2"]

    # 1x1 projection: BN folded, block-diagonal over the packed W blocks.
    sc_p, _ = bn_fold(p["proj_gamma"], p["proj_beta"])
    w_proj = p["proj_w"] * sc_p                                 # (32, 16)
    fp["proj_bd"] = jnp.kron(jnp.eye(ow, dtype=jnp.float32), w_proj)   # (LP, LO)
    fp["proj_b"] = jnp.tile(p["proj_beta"].reshape(1, C_OUT), (1, ow))
    return fp


# ----------------------------------------------------------------------------
# Forward: stem + MBConv block 0 of efficientnet-b0 (takes packed params)
# ----------------------------------------------------------------------------
def efficientnet_b0_backbone(x_nchw, fp):
    x = jnp.transpose(x_nchw, (0, 2, 3, 1))                     # NCHW -> NHWC
    N = x.shape[0]

    # stem "same" static padding for stride-2 3x3, then im2col (tiny XLA
    # gather).  TODO(synk): move the patch extraction in-kernel for
    # 224x224-scale inputs.
    xpad = jnp.pad(x, ((0, 0), (0, 1), (0, 1), (0, 0)))
    patches, OH, OW = im2col(xpad, 3, 2)                        # (N,OH,OW,27)
    patches = jnp.pad(patches, ((0, 0), (0, 0), (0, 0), (0, C_STEM - 27)))
    patches = patches.reshape(N, OH, OW * C_STEM)               # lane-packed

    LP = OW * C_STEM
    LO = OW * C_OUT

    flops = N * (3 * 2 * OH * LP * LP + 9 * 2 * OH * LP + 2 * LP * C_STEM
                 + 4 * C_STEM * C_SE + 2 * C_STEM * LP + 2 * OH * LP * LO
                 + 10 * OH * LP)
    transcendentals = N * (4 * OH * LP + C_SE + 2 * C_STEM)
    weight_bytes = 4 * (3 * LP * LP + 3 * LP + 9 * LP + LP + LP * C_STEM
                        + 2 * C_STEM * C_SE + C_SE + C_STEM + C_STEM * LP
                        + LP * LO + LO)
    bytes_accessed = 4 * N * OH * (LP + LO) + weight_bytes

    def wspec(*shape):
        return pl.BlockSpec(shape, lambda n, _nd=len(shape): (0,) * _nd)

    out_pk = pl.pallas_call(
        _fused_backbone_kernel,
        out_shape=jax.ShapeDtypeStruct((N, OH, LO), jnp.float32),
        grid=(N,),
        in_specs=[
            pl.BlockSpec((1, OH, LP), lambda n: (n, 0, 0)),     # im2col patches
            wspec(3, LP, LP),                                   # shifted stem BDs
            wspec(3, 1, LP),                                    # shifted stem biases
            wspec(9, LP),                                       # depthwise weights
            wspec(1, LP),                                       # depthwise bias
            wspec(LP, C_STEM),                                  # SE pool matrix
            wspec(C_STEM, C_SE),                                # SE w1
            wspec(1, C_SE),                                     # SE b1
            wspec(C_SE, C_STEM),                                # SE w2
            wspec(1, C_STEM),                                   # SE b2
            wspec(C_STEM, LP),                                  # SE broadcast matrix
            wspec(LP, LO),                                      # projection BD
            wspec(1, LO),                                       # projection bias
        ],
        out_specs=pl.BlockSpec((1, OH, LO), lambda n: (n, 0, 0)),
        scratch_shapes=[pltpu.VMEM((OH + 2, LP), jnp.float32)],
        compiler_params=pltpu.CompilerParams(
            dimension_semantics=("parallel",),
            vmem_limit_bytes=VMEM_LIMIT,
        ),
        cost_estimate=pl.CostEstimate(flops=flops,
                                      transcendentals=transcendentals,
                                      bytes_accessed=bytes_accessed),
    )(patches, fp["stem_bd"], fp["stem_b"], fp["dw_w"], fp["dw_b"],
      fp["pool_p"], fp["se_w1"], fp["se_b1"], fp["se_w2"], fp["se_b2"],
      fp["bcast_p"], fp["proj_bd"], fp["proj_b"])

    out = out_pk.reshape(N, OH, OW, C_OUT)
    return jnp.transpose(out, (0, 3, 1, 2))                     # back to NCHW


# ----------------------------------------------------------------------------
# Pure-JAX reference (uses raw, unfolded params) for correctness check
# ----------------------------------------------------------------------------
def reference_forward(x_nchw, p):
    x = jnp.transpose(x_nchw, (0, 2, 3, 1))
    xpad = jnp.pad(x, ((0, 0), (0, 1), (0, 1), (0, 0)))
    y = jax.lax.conv_general_dilated(
        xpad, p["stem_w"], (2, 2), "VALID",
        dimension_numbers=("NHWC", "HWIO", "NHWC"),
    )
    sc, bi = bn_fold(p["stem_gamma"], p["stem_beta"])
    y = y * sc.reshape(1, 1, 1, -1) + bi.reshape(1, 1, 1, -1)
    y = y * jax.nn.sigmoid(y)

    H, W = y.shape[1], y.shape[2]
    ypad = jnp.pad(y, ((0, 0), (1, 1), (1, 1), (0, 0)))
    acc = jnp.zeros_like(y)
    for dh in range(3):
        for dw in range(3):
            acc = acc + ypad[:, dh:dh + H, dw:dw + W, :] * p["dw_w"][dh, dw, :]
    sc_d, bi_d = bn_fold(p["dw_gamma"], p["dw_beta"])
    z = acc * sc_d.reshape(1, 1, 1, -1) + bi_d.reshape(1, 1, 1, -1)
    z = z * jax.nn.sigmoid(z)

    pooled = jnp.mean(z, axis=(1, 2))                   # (N, C)
    h = pooled @ p["se_w1"] + p["se_b1"]
    h = h * jax.nn.sigmoid(h)
    s = jax.nn.sigmoid(h @ p["se_w2"] + p["se_b2"])
    z = z * s[:, None, None, :]

    sc_p, bi_p = bn_fold(p["proj_gamma"], p["proj_beta"])
    out = jnp.einsum("nhwc,cd->nhwd", z, p["proj_w"])
    out = out * sc_p.reshape(1, 1, 1, -1) + bi_p.reshape(1, 1, 1, -1)
    return jnp.transpose(out, (0, 3, 1, 2))


if __name__ == "__main__":
    key = jax.random.PRNGKey(0)
    kx, kp = jax.random.split(key)
    # PyTorch-style NCHW input, small shapes: batch=2, channels=3, spatial=16
    x = jax.random.normal(kx, (2, 3, 16, 16), jnp.float32)
    params = init_params(kp)

    Hin = x.shape[2]
    ow = ((Hin + 1) - 3) // 2 + 1          # stem output width (8 for 16x16)
    packed = pack_params(params, ow)        # one-time offline BN fold + packing

    out = jax.jit(efficientnet_b0_backbone)(x, packed)
    out = jax.block_until_ready(out)

    ref = reference_forward(x, params)
    np.testing.assert_allclose(np.asarray(out), np.asarray(ref),
                               rtol=2e-3, atol=2e-3)
    print("KERNEL_OK")
</pallas_src>

<mosaic_0001>
module attributes {stable_mosaic.version = 11 : i64} {
  func.func @_fused_backbone_kernel(%arg0: i32, %arg1: memref<1x8x256xf32, #tpu.memory_space<vmem>>, %arg2: memref<3x256x256xf32, #tpu.memory_space<vmem>>, %arg3: memref<3x1x256xf32, #tpu.memory_space<vmem>>, %arg4: memref<9x256xf32, #tpu.memory_space<vmem>>, %arg5: memref<1x256xf32, #tpu.memory_space<vmem>>, %arg6: memref<256x32xf32, #tpu.memory_space<vmem>>, %arg7: memref<32x8xf32, #tpu.memory_space<vmem>>, %arg8: memref<1x8xf32, #tpu.memory_space<vmem>>, %arg9: memref<8x32xf32, #tpu.memory_space<vmem>>, %arg10: memref<1x32xf32, #tpu.memory_space<vmem>>, %arg11: memref<32x256xf32, #tpu.memory_space<vmem>>, %arg12: memref<256x128xf32, #tpu.memory_space<vmem>>, %arg13: memref<1x128xf32, #tpu.memory_space<vmem>>, %arg14: memref<1x8x128xf32, #tpu.memory_space<vmem>>, %arg15: memref<10x256xf32, #tpu.memory_space<vmem>>) attributes {dimension_semantics = [#tpu.dimension_semantics<parallel>], iteration_bounds = array<i64: 2>, scalar_prefetch = 0 : i64, scratch_operands = 1 : i64, tpu.core_type = #tpu.core_type<tc>, window_params = [{transform_indices = @transform_0, window_bounds = array<i64: 1, 8, 256>}, {pipeline_mode = #tpu.pipeline_mode<synchronous>, transform_indices = @transform_1, window_bounds = array<i64: 3, 256, 256>}, {pipeline_mode = #tpu.pipeline_mode<synchronous>, transform_indices = @transform_2, window_bounds = array<i64: 3, 1, 256>}, {pipeline_mode = #tpu.pipeline_mode<synchronous>, transform_indices = @transform_3, window_bounds = array<i64: 9, 256>}, {pipeline_mode = #tpu.pipeline_mode<synchronous>, transform_indices = @transform_4, window_bounds = array<i64: 1, 256>}, {pipeline_mode = #tpu.pipeline_mode<synchronous>, transform_indices = @transform_5, window_bounds = array<i64: 256, 32>}, {pipeline_mode = #tpu.pipeline_mode<synchronous>, transform_indices = @transform_6, window_bounds = array<i64: 32, 8>}, {pipeline_mode = #tpu.pipeline_mode<synchronous>, transform_indices = @transform_7, window_bounds = array<i64: 1, 8>}, {pipeline_mode = #tpu.pipeline_mode<synchronous>, transform_indices = @transform_8, window_bounds = array<i64: 8, 32>}, {pipeline_mode = #tpu.pipeline_mode<synchronous>, transform_indices = @transform_9, window_bounds = array<i64: 1, 32>}, {pipeline_mode = #tpu.pipeline_mode<synchronous>, transform_indices = @transform_10, window_bounds = array<i64: 32, 256>}, {pipeline_mode = #tpu.pipeline_mode<synchronous>, transform_indices = @transform_11, window_bounds = array<i64: 256, 128>}, {pipeline_mode = #tpu.pipeline_mode<synchronous>, transform_indices = @transform_12, window_bounds = array<i64: 1, 128>}, {transform_indices = @transform_13, window_bounds = array<i64: 1, 8, 128>}]} {
    %c0 = arith.constant 0 : index
    %c0_0 = arith.constant 0 : index
    %c0_1 = arith.constant 0 : index
    %0 = vector.load %arg1[%c0, %c0_0, %c0_1] : memref<1x8x256xf32, #tpu.memory_space<vmem>>, vector<1x8x256xf32>
    %1 = vector.shape_cast %0 : vector<1x8x256xf32> to vector<8x256xf32>
    %cst = arith.constant 0.000000e+00 : f32
    %2 = vector.broadcast %cst : f32 to vector<1x256xf32>
    %c0_2 = arith.constant 0 : index
    %c0_3 = arith.constant 0 : index
    %3 = vector.load %arg15[%c0_2, %c0_3] : memref<10x256xf32, #tpu.memory_space<vmem>>, vector<1x256xf32>
    tpu.vector_store %arg15[%c0_2, %c0_3], %2 {strides = array<i32>} : memref<10x256xf32, #tpu.memory_space<vmem>>, vector<1x256xf32>,
    %c9 = arith.constant 9 : index
    %c0_4 = arith.constant 0 : index
    %4 = vector.load %arg15[%c9, %c0_4] : memref<10x256xf32, #tpu.memory_space<vmem>>, vector<1x256xf32>
    tpu.vector_store %arg15[%c9, %c0_4], %2 {strides = array<i32>} : memref<10x256xf32, #tpu.memory_space<vmem>>, vector<1x256xf32>,
    %cst_5 = arith.constant 0.000000e+00 : f32
    %5 = vector.broadcast %cst_5 : f32 to vector<8x256xf32>
    %c0_6 = arith.constant 0 : index
    %c0_7 = arith.constant 0 : index
    %c0_8 = arith.constant 0 : index
    %6 = vector.load %arg2[%c0_6, %c0_7, %c0_8] : memref<3x256x256xf32, #tpu.memory_space<vmem>>, vector<1x256x256xf32>
    %7 = vector.shape_cast %6 : vector<1x256x256xf32> to vector<256x256xf32>
    %cst_9 = arith.constant dense<0.000000e+00> : vector<8x256xf32>
    %8 = tpu.matmul %1, %7, %cst_9 {dimension_numbers = #tpu.dot_dimension_numbers<[1], [0], [0], [1], [0, 0, 1, 1], [], []>} : vector<8x256xf32>, vector<256x256xf32>, vector<8x256xf32> -> vector<8x256xf32>
    %c0_10 = arith.constant 0 : index
    %c0_11 = arith.constant 0 : index
    %c0_12 = arith.constant 0 : index
    %9 = vector.load %arg3[%c0_10, %c0_11, %c0_12] : memref<3x1x256xf32, #tpu.memory_space<vmem>>, vector<1x1x256xf32>
    %10 = vector.shape_cast %9 : vector<1x1x256xf32> to vector<1x256xf32>
    %11 = vector.broadcast %10 : vector<1x256xf32> to vector<8x256xf32>
    %12 = arith.addf %8, %11 : vector<8x256xf32>
    %13 = arith.negf %12 : vector<8x256xf32>
    %14 = math.exp %13 : vector<8x256xf32>
    %cst_13 = arith.constant 1.000000e+00 : f32
    %15 = vector.broadcast %cst_13 : f32 to vector<8x256xf32>
    %16 = arith.addf %15, %14 : vector<8x256xf32>
    %17 = arith.divf %15, %16 : vector<8x256xf32>
    %18 = arith.mulf %12, %17 : vector<8x256xf32>
    %c1 = arith.constant 1 : index
    %c0_14 = arith.constant 0 : index
    %19 = vector.load %arg15[%c1, %c0_14] : memref<10x256xf32, #tpu.memory_space<vmem>>, vector<8x256xf32>
    tpu.vector_store %arg15[%c1, %c0_14], %18 {strides = array<i32>} : memref<10x256xf32, #tpu.memory_space<vmem>>, vector<8x256xf32>,
    %c0_15 = arith.constant 0 : index
    %c0_16 = arith.constant 0 : index
    %20 = vector.load %arg15[%c0_15, %c0_16] : memref<10x256xf32, #tpu.memory_space<vmem>>, vector<8x256xf32>
    %c0_17 = arith.constant 0 : index
    %c0_18 = arith.constant 0 : index
    %21 = vector.load %arg4[%c0_17, %c0_18] : memref<9x256xf32, #tpu.memory_space<vmem>>, vector<1x256xf32>
    %22 = vector.broadcast %21 : vector<1x256xf32> to vector<8x256xf32>
    %23 = arith.mulf %20, %22 : vector<8x256xf32>
    %24 = arith.addf %5, %23 : vector<8x256xf32>
    %c1_19 = arith.constant 1 : index
    %c0_20 = arith.constant 0 : index
    %25 = vector.load %arg15[%c1_19, %c0_20] : memref<10x256xf32, #tpu.memory_space<vmem>>, vector<8x256xf32>
    %c3 = arith.constant 3 : index
    %c0_21 = arith.constant 0 : index
    %26 = vector.load %arg4[%c3, %c0_21] : memref<9x256xf32, #tpu.memory_space<vmem>>, vector<1x256xf32>
    %27 = vector.broadcast %26 : vector<1x256xf32> to vector<8x256xf32>
    %28 = arith.mulf %25, %27 : vector<8x256xf32>
    %29 = arith.addf %24, %28 : vector<8x256xf32>
    %c2 = arith.constant 2 : index
    %c0_22 = arith.constant 0 : index
    %30 = vector.load %arg15[%c2, %c0_22] : memref<10x256xf32, #tpu.memory_space<vmem>>, vector<8x256xf32>
    %c6 = arith.constant 6 : index
    %c0_23 = arith.constant 0 : index
    %31 = vector.load %arg4[%c6, %c0_23] : memref<9x256xf32, #tpu.memory_space<vmem>>, vector<1x256xf32>
    %32 = vector.broadcast %31 : vector<1x256xf32> to vector<8x256xf32>
    %33 = arith.mulf %30, %32 : vector<8x256xf32>
    %34 = arith.addf %29, %33 : vector<8x256xf32>
    %c1_24 = arith.constant 1 : index
    %c0_25 = arith.constant 0 : index
    %c0_26 = arith.constant 0 : index
    %35 = vector.load %arg2[%c1_24, %c0_25, %c0_26] : memref<3x256x256xf32, #tpu.memory_space<vmem>>, vector<1x256x256xf32>
    %36 = vector.shape_cast %35 : vector<1x256x256xf32> to vector<256x256xf32>
    %cst_27 = arith.constant dense<0.000000e+00> : vector<8x256xf32>
    %37 = tpu.matmul %1, %36, %cst_27 {dimension_numbers = #tpu.dot_dimension_numbers<[1], [0], [0], [1], [0, 0, 1, 1], [], []>} : vector<8x256xf32>, vector<256x256xf32>, vector<8x256xf32> -> vector<8x256xf32>
    %c1_28 = arith.constant 1 : index
    %c0_29 = arith.constant 0 : index
    %c0_30 = arith.constant 0 : index
    %38 = vector.load %arg3[%c1_28, %c0_29, %c0_30] : memref<3x1x256xf32, #tpu.memory_space<vmem>>, vector<1x1x256xf32>
    %39 = vector.shape_cast %38 : vector<1x1x256xf32> to vector<1x256xf32>
    %40 = vector.broadcast %39 : vector<1x256xf32> to vector<8x256xf32>
    %41 = arith.addf %37, %40 : vector<8x256xf32>
    %42 = arith.negf %41 : vector<8x256xf32>
    %43 = math.exp %42 : vector<8x256xf32>
    %cst_31 = arith.constant 1.000000e+00 : f32
    %44 = vector.broadcast %cst_31 : f32 to vector<8x256xf32>
    %45 = arith.addf %44, %43 : vector<8x256xf32>
    %46 = arith.divf %44, %45 : vector<8x256xf32>
    %47 = arith.mulf %41, %46 : vector<8x256xf32>
    %c1_32 = arith.constant 1 : index
    %c0_33 = arith.constant 0 : index
    %48 = vector.load %arg15[%c1_32, %c0_33] : memref<10x256xf32, #tpu.memory_space<vmem>>, vector<8x256xf32>
    tpu.vector_store %arg15[%c1_32, %c0_33], %47 {strides = array<i32>} : memref<10x256xf32, #tpu.memory_space<vmem>>, vector<8x256xf32>,
    %c0_34 = arith.constant 0 : index
    %c0_35 = arith.constant 0 : index
    %49 = vector.load %arg15[%c0_34, %c0_35] : memref<10x256xf32, #tpu.memory_space<vmem>>, vector<8x256xf32>
    %c1_36 = arith.constant 1 : index
    %c0_37 = arith.constant 0 : index
    %50 = vector.load %arg4[%c1_36, %c0_37] : memref<9x256xf32, #tpu.memory_space<vmem>>, vector<1x256xf32>
    %51 = vector.broadcast %50 : vector<1x256xf32> to vector<8x256xf32>
    %52 = arith.mulf %49, %51 : vector<8x256xf32>
    %53 = arith.addf %34, %52 : vector<8x256xf32>
    %c1_38 = arith.constant 1 : index
    %c0_39 = arith.constant 0 : index
    %54 = vector.load %arg15[%c1_38, %c0_39] : memref<10x256xf32, #tpu.memory_space<vmem>>, vector<8x256xf32>
    %c4 = arith.constant 4 : index
    %c0_40 = arith.constant 0 : index
    %55 = vector.load %arg4[%c4, %c0_40] : memref<9x256xf32, #tpu.memory_space<vmem>>, vector<1x256xf32>
    %56 = vector.broadcast %55 : vector<1x256xf32> to vector<8x256xf32>
    %57 = arith.mulf %54, %56 : vector<8x256xf32>
    %58 = arith.addf %53, %57 : vector<8x256xf32>
    %c2_41 = arith.constant 2 : index
    %c0_42 = arith.constant 0 : index
    %59 = vector.load %arg15[%c2_41, %c0_42] : memref<10x256xf32, #tpu.memory_space<vmem>>, vector<8x256xf32>
    %c7 = arith.constant 7 : index
    %c0_43 = arith.constant 0 : index
    %60 = vector.load %arg4[%c7, %c0_43] : memref<9x256xf32, #tpu.memory_space<vmem>>, vector<1x256xf32>
    %61 = vector.broadcast %60 : vector<1x256xf32> to vector<8x256xf32>
    %62 = arith.mulf %59, %61 : vector<8x256xf32>
    %63 = arith.addf %58, %62 : vector<8x256xf32>
    %c2_44 = arith.constant 2 : index
    %c0_45 = arith.constant 0 : index
    %c0_46 = arith.constant 0 : index
    %64 = vector.load %arg2[%c2_44, %c0_45, %c0_46] : memref<3x256x256xf32, #tpu.memory_space<vmem>>, vector<1x256x256xf32>
    %65 = vector.shape_cast %64 : vector<1x256x256xf32> to vector<256x256xf32>
    %cst_47 = arith.constant dense<0.000000e+00> : vector<8x256xf32>
    %66 = tpu.matmul %1, %65, %cst_47 {dimension_numbers = #tpu.dot_dimension_numbers<[1], [0], [0], [1], [0, 0, 1, 1], [], []>} : vector<8x256xf32>, vector<256x256xf32>, vector<8x256xf32> -> vector<8x256xf32>
    %c2_48 = arith.constant 2 : index
    %c0_49 = arith.constant 0 : index
    %c0_50 = arith.constant 0 : index
    %67 = vector.load %arg3[%c2_48, %c0_49, %c0_50] : memref<3x1x256xf32, #tpu.memory_space<vmem>>, vector<1x1x256xf32>
    %68 = vector.shape_cast %67 : vector<1x1x256xf32> to vector<1x256xf32>
    %69 = vector.broadcast %68 : vector<1x256xf32> to vector<8x256xf32>
    %70 = arith.addf %66, %69 : vector<8x256xf32>
    %71 = arith.negf %70 : vector<8x256xf32>
    %72 = math.exp %71 : vector<8x256xf32>
    %cst_51 = arith.constant 1.000000e+00 : f32
    %73 = vector.broadcast %cst_51 : f32 to vector<8x256xf32>
    %74 = arith.addf %73, %72 : vector<8x256xf32>
    %75 = arith.divf %73, %74 : vector<8x256xf32>
    %76 = arith.mulf %70, %75 : vector<8x256xf32>
    %c1_52 = arith.constant 1 : index
    %c0_53 = arith.constant 0 : index
    %77 = vector.load %arg15[%c1_52, %c0_53] : memref<10x256xf32, #tpu.memory_space<vmem>>, vector<8x256xf32>
    tpu.vector_store %arg15[%c1_52, %c0_53], %76 {strides = array<i32>} : memref<10x256xf32, #tpu.memory_space<vmem>>, vector<8x256xf32>,
    %c0_54 = arith.constant 0 : index
    %c0_55 = arith.constant 0 : index
    %78 = vector.load %arg15[%c0_54, %c0_55] : memref<10x256xf32, #tpu.memory_space<vmem>>, vector<8x256xf32>
    %c2_56 = arith.constant 2 : index
    %c0_57 = arith.constant 0 : index
    %79 = vector.load %arg4[%c2_56, %c0_57] : memref<9x256xf32, #tpu.memory_space<vmem>>, vector<1x256xf32>
    %80 = vector.broadcast %79 : vector<1x256xf32> to vector<8x256xf32>
    %81 = arith.mulf %78, %80 : vector<8x256xf32>
    %82 = arith.addf %63, %81 : vector<8x256xf32>
    %c1_58 = arith.constant 1 : index
    %c0_59 = arith.constant 0 : index
    %83 = vector.load %arg15[%c1_58, %c0_59] : memref<10x256xf32, #tpu.memory_space<vmem>>, vector<8x256xf32>
    %c5 = arith.constant 5 : index
    %c0_60 = arith.constant 0 : index
    %84 = vector.load %arg4[%c5, %c0_60] : memref<9x256xf32, #tpu.memory_space<vmem>>, vector<1x256xf32>
    %85 = vector.broadcast %84 : vector<1x256xf32> to vector<8x256xf32>
    %86 = arith.mulf %83, %85 : vector<8x256xf32>
    %87 = arith.addf %82, %86 : vector<8x256xf32>
    %c2_61 = arith.constant 2 : index
    %c0_62 = arith.constant 0 : index
    %88 = vector.load %arg15[%c2_61, %c0_62] : memref<10x256xf32, #tpu.memory_space<vmem>>, vector<8x256xf32>
    %c8 = arith.constant 8 : index
    %c0_63 = arith.constant 0 : index
    %89 = vector.load %arg4[%c8, %c0_63] : memref<9x256xf32, #tpu.memory_space<vmem>>, vector<1x256xf32>
    %90 = vector.broadcast %89 : vector<1x256xf32> to vector<8x256xf32>
    %91 = arith.mulf %88, %90 : vector<8x256xf32>
    %92 = arith.addf %87, %91 : vector<8x256xf32>
    %c0_64 = arith.constant 0 : index
    %c0_65 = arith.constant 0 : index
    %93 = vector.load %arg5[%c0_64, %c0_65] : memref<1x256xf32, #tpu.memory_space<vmem>>, vector<1x256xf32>
    %94 = vector.broadcast %93 : vector<1x256xf32> to vector<8x256xf32>
    %95 = arith.addf %92, %94 : vector<8x256xf32>
    %96 = arith.negf %95 : vector<8x256xf32>
    %97 = math.exp %96 : vector<8x256xf32>
    %cst_66 = arith.constant 1.000000e+00 : f32
    %98 = vector.broadcast %cst_66 : f32 to vector<8x256xf32>
    %99 = arith.addf %98, %97 : vector<8x256xf32>
    %100 = arith.divf %98, %99 : vector<8x256xf32>
    %101 = arith.mulf %95, %100 : vector<8x256xf32>
    %cst_67 = arith.constant dense<0.000000e+00> : vector<256xf32>
    %102 = vector.multi_reduction <add>, %101, %cst_67 [0] : vector<8x256xf32> to vector<256xf32>
    %103 = vector.shape_cast %102 : vector<256xf32> to vector<1x256xf32>
    %c0_68 = arith.constant 0 : index
    %c0_69 = arith.constant 0 : index
    %104 = vector.load %arg6[%c0_68, %c0_69] : memref<256x32xf32, #tpu.memory_space<vmem>>, vector<256x32xf32>
    %cst_70 = arith.constant dense<0.000000e+00> : vector<1x32xf32>
    %105 = tpu.matmul %103, %104, %cst_70 {dimension_numbers = #tpu.dot_dimension_numbers<[1], [0], [0], [1], [0, 0, 1, 1], [], []>} : vector<1x256xf32>, vector<256x32xf32>, vector<1x32xf32> -> vector<1x32xf32>
    %cst_71 = arith.constant 1.562500e-02 : f32
    %106 = vector.broadcast %cst_71 : f32 to vector<1x32xf32>
    %107 = arith.mulf %105, %106 : vector<1x32xf32>
    %c0_72 = arith.constant 0 : index
    %c0_73 = arith.constant 0 : index
    %108 = vector.load %arg7[%c0_72, %c0_73] : memref<32x8xf32, #tpu.memory_space<vmem>>, vector<32x8xf32>
    %cst_74 = arith.constant dense<0.000000e+00> : vector<1x8xf32>
    %109 = tpu.matmul %107, %108, %cst_74 {dimension_numbers = #tpu.dot_dimension_numbers<[1], [0], [0], [1], [0, 0, 1, 1], [], []>} : vector<1x32xf32>, vector<32x8xf32>, vector<1x8xf32> -> vector<1x8xf32>
    %c0_75 = arith.constant 0 : index
    %c0_76 = arith.constant 0 : index
    %110 = vector.load %arg8[%c0_75, %c0_76] : memref<1x8xf32, #tpu.memory_space<vmem>>, vector<1x8xf32>
    %111 = arith.addf %109, %110 : vector<1x8xf32>
    %112 = arith.negf %111 : vector<1x8xf32>
    %113 = math.exp %112 : vector<1x8xf32>
    %cst_77 = arith.constant 1.000000e+00 : f32
    %114 = vector.broadcast %cst_77 : f32 to vector<1x8xf32>
    %115 = arith.addf %114, %113 : vector<1x8xf32>
    %116 = arith.divf %114, %115 : vector<1x8xf32>
    %117 = arith.mulf %111, %116 : vector<1x8xf32>
    %c0_78 = arith.constant 0 : index
    %c0_79 = arith.constant 0 : index
    %118 = vector.load %arg9[%c0_78, %c0_79] : memref<8x32xf32, #tpu.memory_space<vmem>>, vector<8x32xf32>
    %cst_80 = arith.constant dense<0.000000e+00> : vector<1x32xf32>
    %119 = tpu.matmul %117, %118, %cst_80 {dimension_numbers = #tpu.dot_dimension_numbers<[1], [0], [0], [1], [0, 0, 1, 1], [], []>} : vector<1x8xf32>, vector<8x32xf32>, vector<1x32xf32> -> vector<1x32xf32>
    %c0_81 = arith.constant 0 : index
    %c0_82 = arith.constant 0 : index
    %120 = vector.load %arg10[%c0_81, %c0_82] : memref<1x32xf32, #tpu.memory_space<vmem>>, vector<1x32xf32>
    %121 = arith.addf %119, %120 : vector<1x32xf32>
    %122 = arith.negf %121 : vector<1x32xf32>
    %123 = math.exp %122 : vector<1x32xf32>
    %cst_83 = arith.constant 1.000000e+00 : f32
    %124 = vector.broadcast %cst_83 : f32 to vector<1x32xf32>
    %125 = arith.addf %124, %123 : vector<1x32xf32>
    %126 = arith.divf %124, %125 : vector<1x32xf32>
    %c0_84 = arith.constant 0 : index
    %c0_85 = arith.constant 0 : index
    %127 = vector.load %arg11[%c0_84, %c0_85] : memref<32x256xf32, #tpu.memory_space<vmem>>, vector<32x256xf32>
    %cst_86 = arith.constant dense<0.000000e+00> : vector<1x256xf32>
    %128 = tpu.matmul %126, %127, %cst_86 {dimension_numbers = #tpu.dot_dimension_numbers<[1], [0], [0], [1], [0, 0, 1, 1], [], []>} : vector<1x32xf32>, vector<32x256xf32>, vector<1x256xf32> -> vector<1x256xf32>
    %129 = vector.broadcast %128 : vector<1x256xf32> to vector<8x256xf32>
    %130 = arith.mulf %101, %129 : vector<8x256xf32>
    %c0_87 = arith.constant 0 : index
    %c0_88 = arith.constant 0 : index
    %131 = vector.load %arg12[%c0_87, %c0_88] : memref<256x128xf32, #tpu.memory_space<vmem>>, vector<256x128xf32>
    %cst_89 = arith.constant dense<0.000000e+00> : vector<8x128xf32>
    %132 = tpu.matmul %130, %131, %cst_89 {dimension_numbers = #tpu.dot_dimension_numbers<[1], [0], [0], [1], [0, 0, 1, 1], [], []>} : vector<8x256xf32>, vector<256x128xf32>, vector<8x128xf32> -> vector<8x128xf32>
    %c0_90 = arith.constant 0 : index
    %c0_91 = arith.constant 0 : index
    %133 = vector.load %arg13[%c0_90, %c0_91] : memref<1x128xf32, #tpu.memory_space<vmem>>, vector<1x128xf32>
    %134 = vector.broadcast %133 : vector<1x128xf32> to vector<8x128xf32>
    %135 = arith.addf %132, %134 : vector<8x128xf32>
    %c0_92 = arith.constant 0 : index
    %c0_93 = arith.constant 0 : index
    %c0_94 = arith.constant 0 : index
    %136 = vector.load %arg14[%c0_92, %c0_93, %c0_94] : memref<1x8x128xf32, #tpu.memory_space<vmem>>, vector<1x8x128xf32>
    %137 = vector.shape_cast %136 : vector<1x8x128xf32> to vector<8x128xf32>
    %138 = vector.shape_cast %135 : vector<8x128xf32> to vector<1x8x128xf32>
    tpu.vector_store %arg14[%c0_92, %c0_93, %c0_94], %138 {strides = array<i32>} : memref<1x8x128xf32, #tpu.memory_space<vmem>>, vector<1x8x128xf32>,
    return
  }
  func.func @transform_0(%arg0: i32) -> (i32, i32, i32) {
    %c0_i32 = arith.constant 0 : i32
    %c0_i32_0 = arith.constant 0 : i32
    %c0_i32_1 = arith.constant 0 : i32
    return %arg0, %c0_i32, %c0_i32_0 : i32, i32, i32
  }
  func.func @transform_1(%arg0: i32) -> (i32, i32, i32) {
    %c0_i32 = arith.constant 0 : i32
    %c0_i32_0 = arith.constant 0 : i32
    %c0_i32_1 = arith.constant 0 : i32
    %c0_i32_2 = arith.constant 0 : i32
    return %c0_i32, %c0_i32_0, %c0_i32_1 : i32, i32, i32
  }
  func.func @transform_2(%arg0: i32) -> (i32, i32, i32) {
    %c0_i32 = arith.constant 0 : i32
    %c0_i32_0 = arith.constant 0 : i32
    %c0_i32_1 = arith.constant 0 : i32
    %c0_i32_2 = arith.constant 0 : i32
    return %c0_i32, %c0_i32_0, %c0_i32_1 : i32, i32, i32
  }
  func.func @transform_3(%arg0: i32) -> (i32, i32) {
    %c0_i32 = arith.constant 0 : i32
    %c0_i32_0 = arith.constant 0 : i32
    %c0_i32_1 = arith.constant 0 : i32
    return %c0_i32, %c0_i32_0 : i32, i32
  }
  func.func @transform_4(%arg0: i32) -> (i32, i32) {
    %c0_i32 = arith.constant 0 : i32
    %c0_i32_0 = arith.constant 0 : i32
    %c0_i32_1 = arith.constant 0 : i32
    return %c0_i32, %c0_i32_0 : i32, i32
  }
  func.func @transform_5(%arg0: i32) -> (i32, i32) {
    %c0_i32 = arith.constant 0 : i32
    %c0_i32_0 = arith.constant 0 : i32
    %c0_i32_1 = arith.constant 0 : i32
    return %c0_i32, %c0_i32_0 : i32, i32
  }
  func.func @transform_6(%arg0: i32) -> (i32, i32) {
    %c0_i32 = arith.constant 0 : i32
    %c0_i32_0 = arith.constant 0 : i32
    %c0_i32_1 = arith.constant 0 : i32
    return %c0_i32, %c0_i32_0 : i32, i32
  }
  func.func @transform_7(%arg0: i32) -> (i32, i32) {
    %c0_i32 = arith.constant 0 : i32
    %c0_i32_0 = arith.constant 0 : i32
    %c0_i32_1 = arith.constant 0 : i32
    return %c0_i32, %c0_i32_0 : i32, i32
  }
  func.func @transform_8(%arg0: i32) -> (i32, i32) {
    %c0_i32 = arith.constant 0 : i32
    %c0_i32_0 = arith.constant 0 : i32
    %c0_i32_1 = arith.constant 0 : i32
    return %c0_i32, %c0_i32_0 : i32, i32
  }
  func.func @transform_9(%arg0: i32) -> (i32, i32) {
    %c0_i32 = arith.constant 0 : i32
    %c0_i32_0 = arith.constant 0 : i32
    %c0_i32_1 = arith.constant 0 : i32
    return %c0_i32, %c0_i32_0 : i32, i32
  }
  func.func @transform_10(%arg0: i32) -> (i32, i32) {
    %c0_i32 = arith.constant 0 : i32
    %c0_i32_0 = arith.constant 0 : i32
    %c0_i32_1 = arith.constant 0 : i32
    return %c0_i32, %c0_i32_0 : i32, i32
  }
  func.func @transform_11(%arg0: i32) -> (i32, i32) {
    %c0_i32 = arith.constant 0 : i32
    %c0_i32_0 = arith.constant 0 : i32
    %c0_i32_1 = arith.constant 0 : i32
    return %c0_i32, %c0_i32_0 : i32, i32
  }
  func.func @transform_12(%arg0: i32) -> (i32, i32) {
    %c0_i32 = arith.constant 0 : i32
    %c0_i32_0 = arith.constant 0 : i32
    %c0_i32_1 = arith.constant 0 : i32
    return %c0_i32, %c0_i32_0 : i32, i32
  }
  func.func @transform_13(%arg0: i32) -> (i32, i32, i32) {
    %c0_i32 = arith.constant 0 : i32
    %c0_i32_0 = arith.constant 0 : i32
    %c0_i32_1 = arith.constant 0 : i32
    return %arg0, %c0_i32, %c0_i32_0 : i32, i32, i32
  }
}

</mosaic_0001>

<bundles_post_ra>
// kernel: efficientnet_b0_backbone.1
= control target key start
LH: loop header
LB: loop body
LE: loop exit
PB: predicated region body
PF: predicated region fallthrough
CT: control target
= control target key end

     0   :  { %s2459_s25 = smov 0   ;;  %s3429_s0 = inlined_call_operand.vmem [shape: f32[2,8,256], index: 0, kind: input, shape index: {}]   ;;  %s3430_s1 = inlined_call_operand.vmem [shape: f32[3,256,256], index: 1, kind: input, shape index: {}]   ;;  %s3431_s2 = inlined_call_operand.vmem [shape: f32[3,1,256], index: 2, kind: input, shape index: {}]   ;;  %s3432_s3 = inlined_call_operand.vmem [shape: f32[9,256], index: 3, kind: input, shape index: {}]   ;;  %s3433_s4 = inlined_call_operand.vmem [shape: f32[1,256], index: 4, kind: input, shape index: {}]   ;;  %s3434_s5 = inlined_call_operand.vmem [shape: f32[256,32], index: 5, kind: input, shape index: {}]   ;;  %s3435_s6 = inlined_call_operand.vmem [shape: f32[32,8], index: 6, kind: input, shape index: {}]   ;;  %s3436_s7 = inlined_call_operand.vmem [shape: f32[1,8], index: 7, kind: input, shape index: {}]   ;;  %s3437_s8 = inlined_call_operand.vmem [shape: f32[8,32], index: 8, kind: input, shape index: {}]   ;;  %s3438_s9 = inlined_call_operand.vmem [shape: f32[1,32], index: 9, kind: input, shape index: {}]   ;;  %s3439_s10 = inlined_call_operand.vmem [shape: f32[32,256], index: 10, kind: input, shape index: {}]   ;;  %s3440_s11 = inlined_call_operand.vmem [shape: f32[256,128], index: 11, kind: input, shape index: {}]   ;;  %s3441_s12 = inlined_call_operand.vmem [shape: f32[1,128], index: 12, kind: input, shape index: {}]   ;;  %s3442_s13 = inlined_call_operand.vmem [shape: f32[2,8,128], index: 13, kind: output, shape index: {}]  }
   0x1 LB: > { %s1801_s26 = sadd.s32 4294967295, %s2384_s25   ;;  %p1805_p0 = scmp.ge.s32.totalorder %s2384_s25, 1  ;;  %s2384_s25 = sphi %s2459_s25, %s23_s25  }
   0x2   : > { %p387_p1 = scmp.lt.s32.totalorder %s2384_s25, 3 }
   0x4   : > { %p388_p2 = pnand %p1805_p0, %p387_p1 }
   0x5   : > { %v451_v0 = vld [vmem:[%s3430_s1 + $0x8] sm:$0xff] (!%p388_p2)  ;;  %v453_v1 = vld [vmem:[%s3430_s1 + $0x18] sm:$0xff] (!%p388_p2)  ;;  %v450_v2 = vld [vmem:[%s3430_s1] sm:$0xff] (!%p388_p2)  ;;  %p2661_p3 = scmp.lt.s32.totalorder (!%p388_p2), %s1801_s26, 1  ;;  %vm664_vm1 = vcmask (!%p388_p2), 1046528   ;;  %vm700_vm2 = vcmask (!%p388_p2), 1045504  }
   0x6   : > { %391 = sbr.rel (%p388_p2) target bundleno = 1577 (0x629), region = 72  ;;  %v2057_v3 = vpack.c.bf16 (!%p388_p2), %v453_v1, %v451_v0  ;;  %v452_v4 = vld [vmem:[%s3430_s1 + $0x10] sm:$0xff] (!%p388_p2)  ;;  %v455_v5 = vld [vmem:[%s3430_s1 + $0x28] sm:$0xff] (!%p388_p2)  ;;  %v457_v6 = vld [vmem:[%s3430_s1 + $0x38] sm:$0xff] (!%p388_p2)  ;;  %vm2388_vm3 = vmmov (!%p388_p2), 0   ;;  %vm1383_vm4 = vcmask (!%p388_p2), 261120  }
   0x7   : > { %v2059_v7 = vpack.c.bf16 (!%p388_p2), %v452_v4, %v450_v2  ;;  %v2061_v8 = vpack.c.bf16 (!%p388_p2), %v457_v6, %v455_v5  ;;  %v454_v9 = vld [vmem:[%s3430_s1 + $0x20] sm:$0xff] (!%p388_p2)  ;;  %v456_v10 = vld [vmem:[%s3430_s1 + $0x30] sm:$0xff] (!%p388_p2)  ;;  %v459_v11 = vld [vmem:[%s3430_s1 + $0x48] sm:$0xff] (!%p388_p2)  ;;  %vm1466_vm5 = vcmask (!%p388_p2), 64512  }
   0x8   : > { %2058 = vmatprep.subr.bf16.mxu0 (!%p388_p2), %v2057_v3  ;;  %v461_v12 = vld [vmem:[%s3430_s1 + $0x58] sm:$0xff] (!%p388_p2)  ;;  %v1814_v13 = vld [vmem:[%s3430_s1 + $0x208] sm:$0xff] (!%p388_p2)  ;;  %v2063_v15 = vpack.c.bf16 (!%p388_p2), %v456_v10, %v454_v9  ;;  %v458_v17 = vld [vmem:[%s3430_s1 + $0x40] sm:$0xff] (!%p388_p2) }
   0x9   : > { %v1816_v14 = vld [vmem:[%s3430_s1 + $0x218] sm:$0xff] (!%p388_p2)  ;;  %2060 = vmatpush1.bf16.msra.mxu0 (!%p388_p2), %v2059_v7  ;;  %v1813_v18 = vld [vmem:[%s3430_s1 + $0x200] sm:$0xff] (!%p388_p2)  ;;  %v2065_v19 = vpack.c.bf16 (!%p388_p2), %v461_v12, %v459_v11  ;;  %v460_v20 = vld [vmem:[%s3430_s1 + $0x50] sm:$0xff] (!%p388_p2) }
   0xa   : > { %v2121_v16 = vpack.c.bf16 (!%p388_p2), %v1816_v14, %v1814_v13  ;;  %2062 = vmatprep.subr.bf16.mxu0 (!%p388_p2), %v2061_v8  ;;  %v1815_v21 = vld [vmem:[%s3430_s1 + $0x210] sm:$0xff] (!%p388_p2)  ;;  %v463_v22 = vld [vmem:[%s3430_s1 + $0x68] sm:$0xff] (!%p388_p2)  ;;  %v465_v24 = vld [vmem:[%s3430_s1 + $0x78] sm:$0xff] (!%p388_p2)  ;;  %v2067_v30 = vpack.c.bf16 (!%p388_p2), %v460_v20, %v458_v17 }
   0xb   : > { %v2123_v23 = vpack.c.bf16 (!%p388_p2), %v1815_v21, %v1813_v18  ;;  %v1818_v25 = vld [vmem:[%s3430_s1 + $0x228] sm:$0xff] (!%p388_p2)  ;;  %v1820_v26 = vld [vmem:[%s3430_s1 + $0x238] sm:$0xff] (!%p388_p2)  ;;  %v1817_v28 = vld [vmem:[%s3430_s1 + $0x220] sm:$0xff] (!%p388_p2)  ;;  %v2069_v34 = vpack.c.bf16 (!%p388_p2), %v465_v24, %v463_v22 }
   0xc   : > { %2122 = vmatprep.subr.bf16.mxu1 (!%p388_p2), %v2121_v16  ;;  %v2125_v27 = vpack.c.bf16 (!%p388_p2), %v1820_v26, %v1818_v25  ;;  %v1819_v29 = vld [vmem:[%s3430_s1 + $0x230] sm:$0xff] (!%p388_p2)  ;;  %v462_v31 = vld [vmem:[%s3430_s1 + $0x60] sm:$0xff] (!%p388_p2)  ;;  %v1822_v33 = vld [vmem:[%s3430_s1 + $0x248] sm:$0xff] (!%p388_p2) }
   0xd   : > { %2064 = vmatpush1.bf16.msra.mxu0 %v2063_v15  ;;  %2124 = vmatpush1.bf16.msra.mxu1 %v2123_v23  ;;  %v2127_v32 = vpack.c.bf16 %v1819_v29, %v1817_v28  ;;  %v464_v35 = vld [vmem:[%s3430_s1 + $0x70] sm:$0xff]  ;;  %v467_v36 = vld [vmem:[%s3430_s1 + $0x88] sm:$0xff]  ;;  %v1824_v37 = vld [vmem:[%s3430_s1 + $0x258] sm:$0xff]  ;;  %s3445_s26 = smov (!%p2661_p3, %s1801_s26), 1 }
   0xe   : > { %2066 = vmatprep.subr.bf16.mxu0 %v2065_v19  ;;  %2126 = vmatprep.subr.bf16.mxu1 %v2125_v27  ;;  %v469_v38 = vld [vmem:[%s3430_s1 + $0x98] sm:$0xff]  ;;  %v2129_v39 = vpack.c.bf16 %v1824_v37, %v1822_v33  ;;  %v1821_v40 = vld [vmem:[%s3430_s1 + $0x240] sm:$0xff]  ;;  %v1823_v41 = vld [vmem:[%s3430_s1 + $0x250] sm:$0xff]  ;;  %v2071_v44 = vpack.c.bf16 %v464_v35, %v462_v31  ;;  %s1963_s22 = sshll.u32 %s3445_s26, 4  ;;  %s1808_s21 = sshll.u32 %s3445_s26, 3 }
   0xf   : > { %v1826_v42 = vld [vmem:[%s3430_s1 + $0x268] sm:$0xff]  ;;  %v1828_v43 = vld [vmem:[%s3430_s1 + $0x278] sm:$0xff]  ;;  %v466_v45 = vld [vmem:[%s3430_s1 + $0x80] sm:$0xff]  ;;  %v2131_v47 = vpack.c.bf16 %v1823_v41, %v1821_v40  ;;  %v2073_v48 = vpack.c.bf16 %v469_v38, %v467_v36  ;;  %s2738_s20 = scalar_lea.vmem %s3429_s0, %s1963_s22  ;;  %s438_s28 = scalar_lea.vmem %s3442_s13, %s1808_s21 }
  0x10   : > { %v468_v46 = vld [vmem:[%s3430_s1 + $0x90] sm:$0xff]  ;;  %v471_v49 = vld [vmem:[%s3430_s1 + $0xa8] sm:$0xff]  ;;  %v2133_v50 = vpack.c.bf16 %v1828_v43, %v1826_v42  ;;  %v1825_v51 = vld [vmem:[%s3430_s1 + $0x260] sm:$0xff] }
  0x11   : > { %2068 = vmatpush1.bf16.msra.mxu0 %v2067_v30  ;;  %2128 = vmatpush1.bf16.msra.mxu1 %v2127_v32  ;;  %v1827_v52 = vld [vmem:[%s3430_s1 + $0x270] sm:$0xff]  ;;  %v473_v53 = vld [vmem:[%s3430_s1 + $0xb8] sm:$0xff]  ;;  %v1830_v54 = vld [vmem:[%s3430_s1 + $0x288] sm:$0xff]  ;;  %v2075_v56 = vpack.c.bf16 %v468_v46, %v466_v45 }
  0x12   : > { %2070 = vmatprep.subr.bf16.mxu0 %v2069_v34  ;;  %2130 = vmatprep.subr.bf16.mxu1 %v2129_v39  ;;  %v1832_v55 = vld [vmem:[%s3430_s1 + $0x298] sm:$0xff]  ;;  %v470_v57 = vld [vmem:[%s3430_s1 + $0xa0] sm:$0xff]  ;;  %v472_v58 = vld [vmem:[%s3430_s1 + $0xb0] sm:$0xff]  ;;  %v2135_v59 = vpack.c.bf16 %v1827_v52, %v1825_v51  ;;  %v2077_v60 = vpack.c.bf16 %v473_v53, %v471_v49 }
  0x13   : > { %v475_v61 = vld [vmem:[%s3430_s1 + $0xc8] sm:$0xff]  ;;  %v2137_v62 = vpack.c.bf16 %v1832_v55, %v1830_v54  ;;  %v1829_v63 = vld [vmem:[%s3430_s1 + $0x280] sm:$0xff]  ;;  %v1831_v0 = vld [vmem:[%s3430_s1 + $0x290] sm:$0xff]  ;;  %v2079_v4 = vpack.c.bf16 %v472_v58, %v470_v57 }
  0x14   : > { %v477_v1 = vld [vmem:[%s3430_s1 + $0xd8] sm:$0xff]  ;;  %v1834_v2 = vld [vmem:[%s3430_s1 + $0x2a8] sm:$0xff]  ;;  %v474_v5 = vld [vmem:[%s3430_s1 + $0xc0] sm:$0xff]  ;;  %v2139_v7 = vpack.c.bf16 %v1831_v0, %v1829_v63 }
  0x15   : > { %2072 = vmatpush1.bf16.msra.mxu0 %v2071_v44  ;;  %2132 = vmatpush1.bf16.msra.mxu1 %v2131_v47  ;;  %v1836_v3 = vld [vmem:[%s3430_s1 + $0x2b8] sm:$0xff]  ;;  %v476_v6 = vld [vmem:[%s3430_s1 + $0xd0] sm:$0xff]  ;;  %v2081_v8 = vpack.c.bf16 %v477_v1, %v475_v61  ;;  %v479_v9 = vld [vmem:[%s3430_s1 + $0xe8] sm:$0xff] }
  0x16   : > { %2074 = vmatprep.subr.bf16.mxu0 %v2073_v48  ;;  %2134 = vmatprep.subr.bf16.mxu1 %v2133_v50  ;;  %v2141_v10 = vpack.c.bf16 %v1836_v3, %v1834_v2  ;;  %v1833_v11 = vld [vmem:[%s3430_s1 + $0x2a0] sm:$0xff]  ;;  %v1835_v12 = vld [vmem:[%s3430_s1 + $0x2b0] sm:$0xff]  ;;  %v481_v13 = vld [vmem:[%s3430_s1 + $0xf8] sm:$0xff]  ;;  %v2083_v16 = vpack.c.bf16 %v476_v6, %v474_v5 }
  0x17   : > { %v1838_v14 = vld [vmem:[%s3430_s1 + $0x2c8] sm:$0xff]  ;;  %v1840_v15 = vld [vmem:[%s3430_s1 + $0x2d8] sm:$0xff]  ;;  %v478_v17 = vld [vmem:[%s3430_s1 + $0xe0] sm:$0xff]  ;;  %v2143_v19 = vpack.c.bf16 %v1835_v12, %v1833_v11  ;;  %v2085_v20 = vpack.c.bf16 %v481_v13, %v479_v9 }
  0x18   : > { %v480_v18 = vld [vmem:[%s3430_s1 + $0xf0] sm:$0xff]  ;;  %v483_v21 = vld [vmem:[%s3430_s1 + $0x108] sm:$0xff]  ;;  %v2145_v22 = vpack.c.bf16 %v1840_v15, %v1838_v14  ;;  %v1837_v23 = vld [vmem:[%s3430_s1 + $0x2c0] sm:$0xff] }
  0x19   : > { %2076 = vmatpush1.bf16.msra.mxu0 %v2075_v56  ;;  %2136 = vmatpush1.bf16.msra.mxu1 %v2135_v59  ;;  %v1839_v24 = vld [vmem:[%s3430_s1 + $0x2d0] sm:$0xff]  ;;  %v485_v25 = vld [vmem:[%s3430_s1 + $0x118] sm:$0xff]  ;;  %v1842_v26 = vld [vmem:[%s3430_s1 + $0x2e8] sm:$0xff]  ;;  %v2087_v28 = vpack.c.bf16 %v480_v18, %v478_v17 }
  0x1a   : > { %2078 = vmatprep.subr.bf16.mxu0 %v2077_v60  ;;  %2138 = vmatprep.subr.bf16.mxu1 %v2137_v62  ;;  %v1844_v27 = vld [vmem:[%s3430_s1 + $0x2f8] sm:$0xff]  ;;  %v482_v29 = vld [vmem:[%s3430_s1 + $0x100] sm:$0xff]  ;;  %v484_v30 = vld [vmem:[%s3430_s1 + $0x110] sm:$0xff]  ;;  %v2147_v31 = vpack.c.bf16 %v1839_v24, %v1837_v23  ;;  %v2089_v32 = vpack.c.bf16 %v485_v25, %v483_v21 }
  0x1b   : > { %v487_v33 = vld [vmem:[%s3430_s1 + $0x128] sm:$0xff]  ;;  %v2149_v34 = vpack.c.bf16 %v1844_v27, %v1842_v26  ;;  %v1841_v35 = vld [vmem:[%s3430_s1 + $0x2e0] sm:$0xff]  ;;  %v1843_v36 = vld [vmem:[%s3430_s1 + $0x2f0] sm:$0xff]  ;;  %v2091_v40 = vpack.c.bf16 %v484_v30, %v482_v29 }
  0x1c   : > { %v489_v37 = vld [vmem:[%s3430_s1 + $0x138] sm:$0xff]  ;;  %v1846_v38 = vld [vmem:[%s3430_s1 + $0x308] sm:$0xff]  ;;  %v486_v41 = vld [vmem:[%s3430_s1 + $0x120] sm:$0xff]  ;;  %v2151_v43 = vpack.c.bf16 %v1843_v36, %v1841_v35 }
  0x1d   : > { %2080 = vmatpush1.bf16.msra.mxu0 %v2079_v4  ;;  %2140 = vmatpush1.bf16.msra.mxu1 %v2139_v7  ;;  %v1848_v39 = vld [vmem:[%s3430_s1 + $0x318] sm:$0xff]  ;;  %v488_v42 = vld [vmem:[%s3430_s1 + $0x130] sm:$0xff]  ;;  %v2093_v44 = vpack.c.bf16 %v489_v37, %v487_v33  ;;  %v491_v45 = vld [vmem:[%s3430_s1 + $0x148] sm:$0xff] }
  0x1e   : > { %2082 = vmatprep.subr.bf16.mxu0 %v2081_v8  ;;  %2142 = vmatprep.subr.bf16.mxu1 %v2141_v10  ;;  %v2153_v46 = vpack.c.bf16 %v1848_v39, %v1846_v38  ;;  %v1845_v47 = vld [vmem:[%s3430_s1 + $0x300] sm:$0xff]  ;;  %v1847_v48 = vld [vmem:[%s3430_s1 + $0x310] sm:$0xff]  ;;  %v493_v49 = vld [vmem:[%s3430_s1 + $0x158] sm:$0xff]  ;;  %v2095_v52 = vpack.c.bf16 %v488_v42, %v486_v41 }
  0x1f   : > { %v1850_v50 = vld [vmem:[%s3430_s1 + $0x328] sm:$0xff]  ;;  %v1852_v51 = vld [vmem:[%s3430_s1 + $0x338] sm:$0xff]  ;;  %v490_v53 = vld [vmem:[%s3430_s1 + $0x140] sm:$0xff]  ;;  %v2155_v55 = vpack.c.bf16 %v1847_v48, %v1845_v47  ;;  %v2097_v56 = vpack.c.bf16 %v493_v49, %v491_v45 }
  0x20   : > { %v492_v54 = vld [vmem:[%s3430_s1 + $0x150] sm:$0xff]  ;;  %v495_v57 = vld [vmem:[%s3430_s1 + $0x168] sm:$0xff]  ;;  %v2157_v58 = vpack.c.bf16 %v1852_v51, %v1850_v50  ;;  %v1849_v59 = vld [vmem:[%s3430_s1 + $0x320] sm:$0xff] }
  0x21   : > { %2084 = vmatpush1.bf16.msra.mxu0 %v2083_v16  ;;  %2144 = vmatpush1.bf16.msra.mxu1 %v2143_v19  ;;  %v1851_v60 = vld [vmem:[%s3430_s1 + $0x330] sm:$0xff]  ;;  %v497_v61 = vld [vmem:[%s3430_s1 + $0x178] sm:$0xff]  ;;  %v1854_v62 = vld [vmem:[%s3430_s1 + $0x348] sm:$0xff]  ;;  %v2099_v0 = vpack.c.bf16 %v492_v54, %v490_v53 }
  0x22   : > { %2086 = vmatprep.subr.bf16.mxu0 %v2085_v20  ;;  %2146 = vmatprep.subr.bf16.mxu1 %v2145_v22  ;;  %v1856_v63 = vld [vmem:[%s3430_s1 + $0x358] sm:$0xff]  ;;  %v494_v1 = vld [vmem:[%s3430_s1 + $0x160] sm:$0xff]  ;;  %v496_v2 = vld [vmem:[%s3430_s1 + $0x170] sm:$0xff]  ;;  %v2159_v3 = vpack.c.bf16 %v1851_v60, %v1849_v59  ;;  %v2101_v5 = vpack.c.bf16 %v497_v61, %v495_v57 }
  0x23   : > { %v2756_v4 = vld [vmem:[%s2738_s20 + $0x8] sm:$0xff]  ;;  %v2161_v7 = vpack.c.bf16 %v1856_v63, %v1854_v62  ;;  %v1853_v8 = vld [vmem:[%s3430_s1 + $0x340] sm:$0xff]  ;;  %v1855_v9 = vld [vmem:[%s3430_s1 + $0x350] sm:$0xff]  ;;  %v2103_v13 = vpack.c.bf16 %v496_v2, %v494_v1 }
  0x24   : > { %v499_v6 = vld [vmem:[%s3430_s1 + $0x188] sm:$0xff]  ;;  %v501_v10 = vld [vmem:[%s3430_s1 + $0x198] sm:$0xff]  ;;  %590 = vmatprep.mubr.f32.mxu0 %v2756_v4  ;;  %853 = vmatprep.mubr.f32.mxu1 %v2756_v4  ;;  %v498_v14 = vld [vmem:[%s3430_s1 + $0x180] sm:$0xff]  ;;  %v2163_v16 = vpack.c.bf16 %v1855_v9, %v1853_v8 }
  0x25   : > { %2088 = vmatpush1.bf16.msra.mxu0 %v2087_v28  ;;  %2148 = vmatpush1.bf16.msra.mxu1 %v2147_v31  ;;  %v1858_v11 = vld [vmem:[%s3430_s1 + $0x368] sm:$0xff]  ;;  %v1860_v12 = vld [vmem:[%s3430_s1 + $0x378] sm:$0xff]  ;;  %v500_v15 = vld [vmem:[%s3430_s1 + $0x190] sm:$0xff]  ;;  %v2105_v17 = vpack.c.bf16 %v501_v10, %v499_v6 }
  0x26   : > { %2090 = vmatprep.subr.bf16.mxu0 %v2089_v32  ;;  %2150 = vmatprep.subr.bf16.mxu1 %v2149_v34  ;;  %v503_v18 = vld [vmem:[%s3430_s1 + $0x1a8] sm:$0xff]  ;;  %v2165_v19 = vpack.c.bf16 %v1860_v12, %v1858_v11  ;;  %v1857_v20 = vld [vmem:[%s3430_s1 + $0x360] sm:$0xff]  ;;  %v1859_v21 = vld [vmem:[%s3430_s1 + $0x370] sm:$0xff]  ;;  %v2107_v25 = vpack.c.bf16 %v500_v15, %v498_v14 }
  0x27   : > { %v505_v22 = vld [vmem:[%s3430_s1 + $0x1b8] sm:$0xff]  ;;  %v1862_v23 = vld [vmem:[%s3430_s1 + $0x388] sm:$0xff]  ;;  %v502_v26 = vld [vmem:[%s3430_s1 + $0x1a0] sm:$0xff]  ;;  %v2167_v28 = vpack.c.bf16 %v1859_v21, %v1857_v20 }
  0x28   : > { %v1864_v24 = vld [vmem:[%s3430_s1 + $0x398] sm:$0xff]  ;;  %v504_v27 = vld [vmem:[%s3430_s1 + $0x1b0] sm:$0xff]  ;;  %v2109_v29 = vpack.c.bf16 %v505_v22, %v503_v18  ;;  %v507_v30 = vld [vmem:[%s3430_s1 + $0x1c8] sm:$0xff] }
  0x29   : > { %2092 = vmatpush1.bf16.msra.mxu0 %v2091_v40  ;;  %2152 = vmatpush1.bf16.msra.mxu1 %v2151_v43  ;;  %v2169_v31 = vpack.c.bf16 %v1864_v24, %v1862_v23  ;;  %v1861_v32 = vld [vmem:[%s3430_s1 + $0x380] sm:$0xff]  ;;  %v1863_v33 = vld [vmem:[%s3430_s1 + $0x390] sm:$0xff]  ;;  %v509_v34 = vld [vmem:[%s3430_s1 + $0x1d8] sm:$0xff]  ;;  %v2111_v37 = vpack.c.bf16 %v504_v27, %v502_v26 }
  0x2a   : > { %2094 = vmatprep.subr.bf16.mxu0 %v2093_v44  ;;  %2154 = vmatprep.subr.bf16.mxu1 %v2153_v46  ;;  %v1866_v35 = vld [vmem:[%s3430_s1 + $0x3a8] sm:$0xff]  ;;  %v1868_v36 = vld [vmem:[%s3430_s1 + $0x3b8] sm:$0xff]  ;;  %v506_v38 = vld [vmem:[%s3430_s1 + $0x1c0] sm:$0xff]  ;;  %v2171_v40 = vpack.c.bf16 %v1863_v33, %v1861_v32  ;;  %v2113_v41 = vpack.c.bf16 %v509_v34, %v507_v30 }
  0x2b   : > { %v508_v39 = vld [vmem:[%s3430_s1 + $0x1d0] sm:$0xff]  ;;  %v511_v42 = vld [vmem:[%s3430_s1 + $0x1e8] sm:$0xff]  ;;  %v2173_v43 = vpack.c.bf16 %v1868_v36, %v1866_v35  ;;  %v1865_v44 = vld [vmem:[%s3430_s1 + $0x3a0] sm:$0xff] }
  0x2c   : > { %v1867_v45 = vld [vmem:[%s3430_s1 + $0x3b0] sm:$0xff]  ;;  %v513_v46 = vld [vmem:[%s3430_s1 + $0x1f8] sm:$0xff]  ;;  %v1870_v47 = vld [vmem:[%s3430_s1 + $0x3c8] sm:$0xff]  ;;  %v2115_v49 = vpack.c.bf16 %v508_v39, %v506_v38 }
  0x2d   : > { %2096 = vmatpush1.bf16.msra.mxu0 %v2095_v52  ;;  %2156 = vmatpush1.bf16.msra.mxu1 %v2155_v55  ;;  %v1872_v48 = vld [vmem:[%s3430_s1 + $0x3d8] sm:$0xff]  ;;  %v510_v50 = vld [vmem:[%s3430_s1 + $0x1e0] sm:$0xff]  ;;  %v512_v51 = vld [vmem:[%s3430_s1 + $0x1f0] sm:$0xff]  ;;  %v2175_v52 = vpack.c.bf16 %v1867_v45, %v1865_v44  ;;  %v2117_v53 = vpack.c.bf16 %v513_v46, %v511_v42 }
  0x2e   : > { %2098 = vmatprep.subr.bf16.mxu0 %v2097_v56  ;;  %2158 = vmatprep.subr.bf16.mxu1 %v2157_v58  ;;  %v2177_v54 = vpack.c.bf16 %v1872_v48, %v1870_v47  ;;  %v1884_v55 = vld [vmem:[%s3430_s1 + $0x408] sm:$0xff]  ;;  %v1869_v56 = vld [vmem:[%s3430_s1 + $0x3c0] sm:$0xff]  ;;  %v1871_v57 = vld [vmem:[%s3430_s1 + $0x3d0] sm:$0xff]  ;;  %v2119_v61 = vpack.c.bf16 %v512_v51, %v510_v50 }
  0x2f   : > { %v1886_v58 = vld [vmem:[%s3430_s1 + $0x418] sm:$0xff]  ;;  %v1874_v59 = vld [vmem:[%s3430_s1 + $0x3e8] sm:$0xff]  ;;  %v2179_v62 = vpack.c.bf16 %v1871_v57, %v1869_v56  ;;  %v1883_v63 = vld [vmem:[%s3430_s1 + $0x400] sm:$0xff] }
  0x30   : > { %v1876_v60 = vld [vmem:[%s3430_s1 + $0x3f8] sm:$0xff]  ;;  %v1885_v1 = vld [vmem:[%s3430_s1 + $0x410] sm:$0xff]  ;;  %v1888_v6 = vld [vmem:[%s3430_s1 + $0x428] sm:$0xff] }
  0x31   : > { %2100 = vmatpush1.bf16.msra.mxu0 %v2099_v0  ;;  %2160 = vmatpush1.bf16.msra.mxu1 %v2159_v3  ;;  %v2185_v0 = vpack.c.bf16 %v1886_v58, %v1884_v55  ;;  %v2181_v2 = vpack.c.bf16 %v1876_v60, %v1874_v59  ;;  %v1873_v3 = vld [vmem:[%s3430_s1 + $0x3e0] sm:$0xff]  ;;  %v2187_v9 = vpack.c.bf16 %v1885_v1, %v1883_v63  ;;  %v1892_v14 = vld [vmem:[%s3430_s1 + $0x448] sm:$0xff]  ;;  %v1894_v15 = vld [vmem:[%s3430_s1 + $0x458] sm:$0xff] }
  0x32   : > { %2102 = vmatprep.subr.bf16.mxu0 %v2101_v5  ;;  %2162 = vmatprep.subr.bf16.mxu1 %v2161_v7  ;;  %v1875_v5 = vld [vmem:[%s3430_s1 + $0x3f0] sm:$0xff]  ;;  %v1890_v7 = vld [vmem:[%s3430_s1 + $0x438] sm:$0xff]  ;;  %v2893_v8 = vld [vmem:[%s2738_s20] sm:$0xff] }
  0x33   : > { %v2183_v10 = vpack.c.bf16 %v1875_v5, %v1873_v3  ;;  %v2189_v11 = vpack.c.bf16 %v1890_v7, %v1888_v6  ;;  %v1887_v12 = vld [vmem:[%s3430_s1 + $0x420] sm:$0xff]  ;;  %v1896_v20 = vld [vmem:[%s3430_s1 + $0x468] sm:$0xff]  ;;  %v1898_v21 = vld [vmem:[%s3430_s1 + $0x478] sm:$0xff] }
  0x34   : > { %v1891_v18 = vld [vmem:[%s3430_s1 + $0x440] sm:$0xff]  ;;  %v2197_v23 = vpack.c.bf16 %v1898_v21, %v1896_v20  ;;  %v1902_v26 = vld [vmem:[%s3430_s1 + $0x498] sm:$0xff]  ;;  %v1901_v30 = vld [vmem:[%s3430_s1 + $0x490] sm:$0xff] }
  0x35   : > { %2104 = vmatpush1.bf16.msra.mxu0 %v2103_v13  ;;  %2164 = vmatpush1.bf16.msra.mxu1 %v2163_v16  ;;  %v1889_v13 = vld [vmem:[%s3430_s1 + $0x430] sm:$0xff]  ;;  %v1895_v24 = vld [vmem:[%s3430_s1 + $0x460] sm:$0xff]  ;;  %v1906_v32 = vld [vmem:[%s3430_s1 + $0x4b8] sm:$0xff] }
  0x36   : > { %2106 = vmatprep.subr.bf16.mxu0 %v2105_v17  ;;  %2166 = vmatprep.subr.bf16.mxu1 %v2165_v19  ;;  %v2191_v16 = vpack.c.bf16 %v1889_v13, %v1887_v12  ;;  %v2193_v17 = vpack.c.bf16 %v1894_v15, %v1892_v14  ;;  %v1893_v19 = vld [vmem:[%s3430_s1 + $0x450] sm:$0xff]  ;;  %v1903_v35 = vld [vmem:[%s3430_s1 + $0x4a0] sm:$0xff]  ;;  %v1910_v38 = vld [vmem:[%s3430_s1 + $0x4d8] sm:$0xff] }
  0x37   : > { %v2195_v22 = vpack.c.bf16 %v1893_v19, %v1891_v18  ;;  %v1905_v36 = vld [vmem:[%s3430_s1 + $0x4b0] sm:$0xff]  ;;  %v1914_v44 = vld [vmem:[%s3430_s1 + $0x4f8] sm:$0xff]  ;;  %v1911_v47 = vld [vmem:[%s3430_s1 + $0x4e0] sm:$0xff] }
  0x38   : > { %v2207_v39 = vpack.c.bf16 %v1905_v36, %v1903_v35  ;;  %v1909_v42 = vld [vmem:[%s3430_s1 + $0x4d0] sm:$0xff]  ;;  %v1918_v50 = vld [vmem:[%s3430_s1 + $0x518] sm:$0xff]  ;;  %v1920_v55 = vld [vmem:[%s3430_s1 + $0x528] sm:$0xff]  ;;  %v441_v35 = vlaneseq  ;;  %v2386_v36 = vmov 0.0  }
  0x39   : > { %2108 = vmatpush1.bf16.msra.mxu0 %v2107_v25  ;;  %2168 = vmatpush1.bf16.msra.mxu1 %v2167_v28  ;;  %v1900_v25 = vld [vmem:[%s3430_s1 + $0x488] sm:$0xff]  ;;  %v1913_v48 = vld [vmem:[%s3430_s1 + $0x4f0] sm:$0xff]  ;;  %v1922_v56 = vld [vmem:[%s3430_s1 + $0x538] sm:$0xff] }
  0x3a   : > { %2110 = vmatprep.subr.bf16.mxu0 %v2109_v29  ;;  %2170 = vmatprep.subr.bf16.mxu1 %v2169_v31  ;;  %v2201_v28 = vpack.c.bf16 %v1902_v26, %v1900_v25  ;;  %v1899_v29 = vld [vmem:[%s3430_s1 + $0x480] sm:$0xff]  ;;  %v1904_v31 = vld [vmem:[%s3430_s1 + $0x4a8] sm:$0xff]  ;;  %v2215_v51 = vpack.c.bf16 %v1913_v48, %v1911_v47  ;;  %v2221_v58 = vpack.c.bf16 %v1922_v56, %v1920_v55  ;;  %v1921_v60 = vld [vmem:[%s3430_s1 + $0x530] sm:$0xff]  ;;  %vm443_vm0 = vcmp.lt.s32.totalorder %v441_v35, 256 }
  0x3b   : > { %v2203_v33 = vpack.c.bf16 %v1901_v30, %v1899_v29  ;;  %v2205_v34 = vpack.c.bf16 %v1906_v32, %v1904_v31  ;;  %v1919_v59 = vld [vmem:[%s3430_s1 + $0x520] sm:$0xff]  ;;  %v1928_v3 = vld [vmem:[%s3430_s1 + $0x568] sm:$0xff]  ;;  %v1930_v5 = vld [vmem:[%s3430_s1 + $0x578] sm:$0xff]  ;;  %445 = vst.msk [vmem:[#allocation2] ss:$8 sm:$0x3] %vm443_vm0, %v2386_v36 }
  0x3c   : > { %v2223_v63 = vpack.c.bf16 %v1921_v60, %v1919_v59  ;;  %v1923_v1 = vld [vmem:[%s3430_s1 + $0x540] sm:$0xff]  ;;  %v2229_v7 = vpack.c.bf16 %v1930_v5, %v1928_v3  ;;  %v1934_v12 = vld [vmem:[%s3430_s1 + $0x598] sm:$0xff]  ;;  %448 = vst.msk [vmem:[#allocation2 + $0x11] ss:$8 sm:$0x3] %vm443_vm0, %v2386_v36  ;;  %v1296_v48 = vld [vmem:[%s3434_s5 + $0xa8] sm:$0xff] }
  0x3d   : > { %2112 = vmatpush1.bf16.msra.mxu0 %v2111_v37  ;;  %2172 = vmatpush1.bf16.msra.mxu1 %v2171_v40  ;;  %v1908_v37 = vld [vmem:[%s3430_s1 + $0x4c8] sm:$0xff]  ;;  %v1931_v15 = vld [vmem:[%s3430_s1 + $0x580] sm:$0xff]  ;;  %v1938_v18 = vld [vmem:[%s3430_s1 + $0x5b8] sm:$0xff] }
  0x3e   : > { %2114 = vmatprep.subr.bf16.mxu0 %v2113_v41  ;;  %2174 = vmatprep.subr.bf16.mxu1 %v2173_v43  ;;  %v2209_v40 = vpack.c.bf16 %v1910_v38, %v1908_v37  ;;  %v1907_v41 = vld [vmem:[%s3430_s1 + $0x4c0] sm:$0xff]  ;;  %v1912_v43 = vld [vmem:[%s3430_s1 + $0x4e8] sm:$0xff]  ;;  %v1946_v29 = vld [vmem:[%s3430_s1 + $0x5f8] sm:$0xff] }
  0x3f   : > { %v2211_v45 = vpack.c.bf16 %v1909_v42, %v1907_v41  ;;  %v2213_v46 = vpack.c.bf16 %v1914_v44, %v1912_v43  ;;  %v1935_v21 = vld [vmem:[%s3430_s1 + $0x5a0] sm:$0xff]  ;;  %v1292_v38 = vld [vmem:[%s3434_s5 + $0x88] sm:$0xff]  ;;  %v1293_v41 = vld [vmem:[%s3434_s5 + $0x90] sm:$0xff] }
  0x40   : > { %v1939_v26 = vld [vmem:[%s3430_s1 + $0x5c0] sm:$0xff]  ;;  %v1294_v42 = vld [vmem:[%s3434_s5 + $0x98] sm:$0xff]  ;;  %v1300_v60 = vld [vmem:[%s3434_s5 + $0xc8] sm:$0xff] }
  0x41   : > { %2116 = vmatpush1.bf16.msra.mxu0 %v2115_v49  ;;  %2176 = vmatpush1.bf16.msra.mxu1 %v2175_v52  ;;  %v1916_v49 = vld [vmem:[%s3430_s1 + $0x508] sm:$0xff]  ;;  %v1943_v32 = vld [vmem:[%s3430_s1 + $0x5e0] sm:$0xff]  ;;  %v2253_v44 = vpack.c.bf16 %v1294_v42, %v1293_v41 }
  0x42   : > { %2118 = vmatprep.subr.bf16.mxu0 %v2117_v53  ;;  %2178 = vmatprep.subr.bf16.mxu1 %v2177_v54  ;;  %v2217_v52 = vpack.c.bf16 %v1918_v50, %v1916_v49  ;;  %v1915_v53 = vld [vmem:[%s3430_s1 + $0x500] sm:$0xff]  ;;  %v1917_v54 = vld [vmem:[%s3430_s1 + $0x510] sm:$0xff] }
  0x43   : > { %v2219_v57 = vpack.c.bf16 %v1917_v54, %v1915_v53  ;;  %v1291_v37 = vld [vmem:[%s3434_s5 + $0x80] sm:$0xff]  ;;  %v1297_v53 = vld [vmem:[%s3434_s5 + $0xb0] sm:$0xff]  ;;  %v1298_v54 = vld [vmem:[%s3434_s5 + $0xb8] sm:$0xff] }
  0x44   : > { %v1295_v47 = vld [vmem:[%s3434_s5 + $0xa0] sm:$0xff]  ;;  %v2261_v56 = vpack.c.bf16 %v1298_v54, %v1297_v53 }
  0x45   : > { %2120 = vmatpush1.bf16.msra.mxu0 %v2119_v61  ;;  %2180 = vmatpush1.bf16.msra.mxu1 %v2179_v62  ;;  %v1924_v61 = vld [vmem:[%s3430_s1 + $0x548] sm:$0xff]  ;;  %v1926_v62 = vld [vmem:[%s3430_s1 + $0x558] sm:$0xff]  ;;  %v2257_v50 = vpack.c.bf16 %v1296_v48, %v1295_v47  ;;  %v1299_v59 = vld [vmem:[%s3434_s5 + $0xc0] sm:$0xff] }
  0x46   : > { %2186 = vmatprep.subr.bf16.mxu0 %v2185_v0  ;;  %2182 = vmatprep.subr.bf16.mxu1 %v2181_v2  ;;  %v2225_v0 = vpack.c.bf16 %v1926_v62, %v1924_v61  ;;  %v1925_v2 = vld [vmem:[%s3430_s1 + $0x550] sm:$0xff]  ;;  %v2265_v62 = vpack.c.bf16 %v1300_v60, %v1299_v59  ;;  %v2387_v59 = vmov 0.0|0.0  }
  0x47   : > { %v2227_v6 = vpack.c.bf16 %v1925_v2, %v1923_v1  ;;  %v1301_v1 = vld [vmem:[%s3434_s5 + $0xd0] sm:$0xff]  ;;  %v1302_v2 = vld [vmem:[%s3434_s5 + $0xd8] sm:$0xff] }
  0x48   : > { %591 = vmatmul.mubr.f32.vlgmr.msra.gmra.mrb[0].mxu0 %v2893_v8  ;;  %v2269_v5 = vpack.c.bf16 %v1302_v2, %v1301_v1 }
  0x49   : > { %2188 = vmatpush1.bf16.msra.mxu0 %v2187_v9  ;;  %2184 = vmatpush1.bf16.msra.mxu1 %v2183_v10  ;;  %v1927_v9 = vld [vmem:[%s3430_s1 + $0x560] sm:$0xff]  ;;  %v1929_v10 = vld [vmem:[%s3430_s1 + $0x570] sm:$0xff] }
  0x4a   : > { %2190 = vmatprep.subr.bf16.mxu0 %v2189_v11  ;;  %1115 = vmatprep.mubr.f32.mxu0 %v2756_v4  ;;  %v1897_v4 = vld [vmem:[%s3430_s1 + $0x470] sm:$0xff]  ;;  %v1932_v11 = vld [vmem:[%s3430_s1 + $0x588] sm:$0xff]  ;;  %v2231_v13 = vpack.c.bf16 %v1929_v10, %v1927_v9  ;;  %v1303_v9 = vld [vmem:[%s3434_s5 + $0xe0] sm:$0xff] }
  0x4b   : > { %v2199_v27 = vpack.c.bf16 %v1897_v4, %v1895_v24  ;;  %v2233_v14 = vpack.c.bf16 %v1934_v12, %v1932_v11  ;;  %v1942_v24 = vld [vmem:[%s3430_s1 + $0x5d8] sm:$0xff]  ;;  %v1304_v10 = vld [vmem:[%s3434_s5 + $0xe8] sm:$0xff]  ;;  %v517_v11 = vshrl.u32 %v441_v35, 7 }
  0x4c   : > { %854 = vmatmul.mubr.f32.vlgmr.msra.gmra.mrb[0].mxu1 %v2893_v8 }
  0x4d   : > { %2192 = vmatpush1.bf16.msra.mxu0 %v2191_v16  ;;  %v1933_v16 = vld [vmem:[%s3430_s1 + $0x590] sm:$0xff] }
  0x4e   : > { %2194 = vmatprep.subr.bf16.mxu0 %v2193_v17  ;;  %v1936_v17 = vld [vmem:[%s3430_s1 + $0x5a8] sm:$0xff]  ;;  %v2235_v19 = vpack.c.bf16 %v1933_v16, %v1931_v15  ;;  %v1305_v16 = vld [vmem:[%s3434_s5 + $0xf0] sm:$0xff] }
  0x4f   : > { %v2237_v20 = vpack.c.bf16 %v1938_v18, %v1936_v17  ;;  %v1288_v15 = vld [vmem:[%s3434_s5 + $0x68] sm:$0xff]  ;;  %v1306_v17 = vld [vmem:[%s3434_s5 + $0xf8] sm:$0xff]  ;;  %v3165_v18 = vsub.s32 0, %v517_v11 }
  0x51   : > { %2196 = vmatpush1.bf16.msra.mxu0 %v2195_v22  ;;  %v1937_v22 = vld [vmem:[%s3430_s1 + $0x5b0] sm:$0xff] }
  0x52   : > { %2198 = vmatprep.subr.bf16.mxu0 %v2197_v23  ;;  %v1940_v23 = vld [vmem:[%s3430_s1 + $0x5c8] sm:$0xff]  ;;  %v2239_v4 = vpack.c.bf16 %v1937_v22, %v1935_v21  ;;  %v2277_v22 = vpack.c.bf16 %v1306_v17, %v1305_v16 }
  0x53   : > { %v2241_v25 = vpack.c.bf16 %v1942_v24, %v1940_v23  ;;  %v1289_v23 = vld [vmem:[%s3434_s5 + $0x70] sm:$0xff]  ;;  %v1290_v24 = vld [vmem:[%s3434_s5 + $0x78] sm:$0xff] }
  0x55   : > { %2200 = vmatpush1.bf16.msra.mxu0 %v2199_v27  ;;  %v1941_v27 = vld [vmem:[%s3430_s1 + $0x5d0] sm:$0xff] }
  0x56   : > { %2202 = vmatprep.subr.bf16.mxu0 %v2201_v28  ;;  %v1944_v28 = vld [vmem:[%s3430_s1 + $0x5e8] sm:$0xff]  ;;  %v2243_v30 = vpack.c.bf16 %v1941_v27, %v1939_v26  ;;  %v1877_v26 = vld [vmem:[%s3431_s2 + $0x2] sm:$0x3]  ;;  %v2279_v27 = vpack.c.bf16 %v1290_v24, %v1289_v23 }
  0x57   : > { %v2245_v31 = vpack.c.bf16 %v1946_v29, %v1944_v28 }
  0x59   : > { %2204 = vmatpush1.bf16.msra.mxu0 %v2203_v33  ;;  %v1945_v33 = vld [vmem:[%s3430_s1 + $0x5f0] sm:$0xff] }
  0x5a   : > { %2206 = vmatprep.subr.bf16.mxu0 %v2205_v34  ;;  %v2247_v34 = vpack.c.bf16 %v1945_v33, %v1943_v32 }
  0x5d   : > { %2208 = vmatpush1.bf16.msra.mxu0 %v2207_v39  ;;  %v1275_v39 = vld [vmem:[%s3434_s5] sm:$0xff] }
  0x5e   : > { %2210 = vmatprep.subr.bf16.mxu0 %v2209_v40  ;;  %v1276_v40 = vld [vmem:[%s3434_s5 + $0x8] sm:$0xff] }
  0x5f   : > { %v2251_v43 = vpack.c.bf16 %v1276_v40, %v1275_v39 }
  0x61   : > { %2212 = vmatpush1.bf16.msra.mxu0 %v2211_v45  ;;  %v1277_v45 = vld [vmem:[%s3434_s5 + $0x10] sm:$0xff] }
  0x62   : > { %2214 = vmatprep.subr.bf16.mxu0 %v2213_v46  ;;  %v1278_v46 = vld [vmem:[%s3434_s5 + $0x18] sm:$0xff] }
  0x63   : > { %v2255_v49 = vpack.c.bf16 %v1278_v46, %v1277_v45 }
  0x65   : > { %2216 = vmatpush1.bf16.msra.mxu0 %v2215_v51  ;;  %v1279_v51 = vld [vmem:[%s3434_s5 + $0x20] sm:$0xff] }
  0x66   : > { %2218 = vmatprep.subr.bf16.mxu0 %v2217_v52  ;;  %v1280_v52 = vld [vmem:[%s3434_s5 + $0x28] sm:$0xff] }
  0x67   : > { %v2259_v55 = vpack.c.bf16 %v1280_v52, %v1279_v51 }
  0x69   : > { %2220 = vmatpush1.bf16.msra.mxu0 %v2219_v57  ;;  %v1281_v57 = vld [vmem:[%s3434_s5 + $0x30] sm:$0xff] }
  0x6a   : > { %2222 = vmatprep.subr.bf16.mxu0 %v2221_v58  ;;  %v1282_v58 = vld [vmem:[%s3434_s5 + $0x38] sm:$0xff] }
  0x6b   : > { %v2263_v61 = vpack.c.bf16 %v1282_v58, %v1281_v57 }
  0x6d   : > { %2224 = vmatpush1.bf16.msra.mxu0 %v2223_v63  ;;  %v1283_v63 = vld [vmem:[%s3434_s5 + $0x40] sm:$0xff] }
  0x6e   : > { %2226 = vmatprep.subr.bf16.mxu0 %v2225_v0  ;;  %v1284_v0 = vld [vmem:[%s3434_s5 + $0x48] sm:$0xff] }
  0x6f   : > { %v2267_v3 = vpack.c.bf16 %v1284_v0, %v1283_v63 }
  0x71   : > { %2228 = vmatpush1.bf16.msra.mxu0 %v2227_v6  ;;  %v1285_v6 = vld [vmem:[%s3434_s5 + $0x50] sm:$0xff] }
  0x72   : > { %2230 = vmatprep.subr.bf16.mxu0 %v2229_v7  ;;  %v1286_v7 = vld [vmem:[%s3434_s5 + $0x58] sm:$0xff] }
  0x73   : > { %v2271_v12 = vpack.c.bf16 %v1286_v7, %v1285_v6 }
  0x75   : > { %2232 = vmatpush1.bf16.msra.mxu0 %v2231_v13  ;;  %v2273_v13 = vpack.c.bf16 %v1304_v10, %v1303_v9 }
  0x76   : > { %2234 = vmatprep.subr.bf16.mxu0 %v2233_v14  ;;  %v1287_v14 = vld [vmem:[%s3434_s5 + $0x60] sm:$0xff] }
  0x77   : > { %v2275_v21 = vpack.c.bf16 %v1288_v15, %v1287_v14  ;;  %v1947_v14 = vld [vmem:[%s3431_s2 + $0x4] sm:$0x3] }
  0x78   : > { %v1044_v15 = vrot.slane %v1947_v14, %v3165_v18 }
  0x79   : > { %2236 = vmatpush1.bf16.msra.mxu0 %v2235_v19  ;;  %v514_v19 = vld [vmem:[%s3431_s2] sm:$0x3] }
  0x7a   : > { %2238 = vmatprep.subr.bf16.mxu0 %v2237_v20  ;;  %v3170_v20 = vsub.s32 1, %v517_v11 }
  0x7c   : > { %v786_v33 = vrot.slane %v1877_v26, %v3170_v20  ;;  %v1048_v16 = vrot.slane %v1947_v14, %v3170_v20 }
  0x7d   : > { %2240 = vmatpush1.bf16.msra.mxu0 %v2239_v4  ;;  %v519_v4 = vrot.slane %v514_v19, %v3165_v18 }
  0x7e   : > { %2242 = vmatprep.subr.bf16.mxu0 %v2241_v25  ;;  %v523_v25 = vrot.slane %v514_v19, %v3170_v20 }
  0x81   : > { %2244 = vmatpush1.bf16.msra.mxu0 %v2243_v30 }
  0x82   : > { %2246 = vmatprep.subr.bf16.mxu0 %v2245_v31  ;;  %v782_v31 = vrot.slane %v1877_v26, %v3165_v18 }
  0x85   : > { %2248 = vmatpush1.bf16.msra.mxu0 %v2247_v34 }
  0x86   : > { %2281 = vmatprep.subr.bf16.mxu0 %v2387_v59 }
  0x88   : > { %1116 = vmatmul.mubr.f32.vlgmr.msra.gmra.mrb[2].mxu0 %v2893_v8  ;;  %v2249_v8 = vpack.c.bf16 %v1292_v38, %v1291_v37 }
  0x89   : > { %2049 = vmatprep.mubr.msk.f32.mxu0 %vm2388_vm3, %v2386_v36 }
  0x8a   : > { %2250 = vmatprep.subr.bf16.mxu1 %v2249_v8 }
  0x8b   : > { %2252 = vmatpush3.bf16.msra.mxu1 %v2251_v43 }
  0x8c   : > { %2254 = vmatprep.subr.bf16.mxu1 %v2253_v44 }
  0x8f   : > { %2256 = vmatpush3.bf16.msra.mxu1 %v2255_v49 }
  0x90   : > { %2258 = vmatprep.subr.bf16.mxu1 %v2257_v50 }
  0x93   : > { %2260 = vmatpush3.bf16.msra.mxu1 %v2259_v55  ;;  %v1378_v55 = vld [vmem:[%s3435_s6] sm:$0xff] }
  0x94   : > { %2262 = vmatprep.subr.bf16.mxu1 %v2261_v56  ;;  %v1379_v56 = vld [vmem:[%s3435_s6 + $0x8] sm:$0xff] }
  0x95   : > { %v2282_v60 = vpack.c.bf16 %v1379_v56, %v1378_v55 }
  0x97   : > { %2264 = vmatpush3.bf16.msra.mxu1 %v2263_v61  ;;  %2283 = vmatpush3.bf16.msra.mxu0 %v2282_v60 }
  0x98   : > { %2266 = vmatprep.subr.bf16.mxu1 %v2265_v62  ;;  %2284 = vmatprep.subr.bf16.mxu0 %v2387_v59 }
  0x9b   : > { %2268 = vmatpush3.bf16.msra.mxu1 %v2267_v3 }
  0x9c   : > { %2270 = vmatprep.subr.bf16.mxu1 %v2269_v5 }
  0x9f   : > { %2272 = vmatpush3.bf16.msra.mxu1 %v2271_v12 }
  0xa0   : > { %2274 = vmatprep.subr.bf16.mxu1 %v2273_v13 }
  0xa3   : > { %2276 = vmatpush3.bf16.msra.mxu1 %v2275_v21 }
  0xa4   : > { %2278 = vmatprep.subr.bf16.mxu1 %v2277_v22 }
  0xa7   : > { %2280 = vmatpush3.bf16.msra.mxu1 %v2279_v27  ;;  %v1812_v27 = vld [vmem:[%s3432_s3 + $0x6] ss:$8 sm:$0x3] }
  0xa8   : > { %2052 = vmatprep.subr.mxu1 %v2386_v36 }
 0x11b   : > { %v592_v28 = vpop.f32.mrb[0].mxu0 }
 0x11c   : > { %v593_v29 = vadd.f32 %v592_v28, %v519_v4  ;;  %v594_v30 = vpop.f32.mrb[1].mxu0  ;;  %v1811_v4 = vld [vmem:[%s3432_s3 + $0x3] ss:$8 sm:$0x3] }
 0x11d   : > { %v595_v32 = vadd.f32 %v594_v30, %v523_v25  ;;  %v649_v25 = vrot.slane %v1811_v4, %v3165_v18  ;;  %v653_v26 = vrot.slane %v1811_v4, %v3170_v20 }
 0x11e   : > { %v1809_v34 = vmul.f32 -1.442695, %v593_v29 }
 0x11f   : > { %v1810_v35 = vmul.f32 -1.442695, %v595_v32  ;;  %v855_v37 = vpop.f32.mrb[0].mxu1 }
 0x120   : > { %2338 = vpow2.f32 %v1809_v34  ;;  %v856_v38 = vadd.f32 %v855_v37, %v782_v31  ;;  %v857_v39 = vpop.f32.mrb[1].mxu1 }
 0x121   : > { %2340 = vpow2.f32 %v1810_v35  ;;  %v858_v8 = vadd.f32 %v857_v39, %v786_v33  ;;  %v685_v33 = vrot.slane %v1812_v27, %v3165_v18  ;;  %v689_v35 = vrot.slane %v1812_v27, %v3170_v20 }
 0x122   : > { %v1878_v40 = vmul.f32 -1.442695, %v856_v38 }
 0x123   : > { %v1879_v41 = vmul.f32 -1.442695, %v858_v8 }
 0x124   : > { %2342 = vpow2.f32 %v1878_v40 }
 0x125   : > { %2344 = vpow2.f32 %v1879_v41 }
 0x12a   : > { %v2339_v42 = vpop.eup %2338 }
 0x12b   : > { %v2341_v43 = vpop.eup %2340  ;;  %v603_v44 = vadd.f32 1.0, %v2339_v42 }
 0x12c   : > { %v604_v45 = vadd.f32 1.0, %v2341_v43 }
 0x12d   : > { %2346 = vrcp.f32 %v603_v44 }
 0x12e   : > { %v2343_v46 = vpop.eup %2342  ;;  %2348 = vrcp.f32 %v604_v45 }
 0x12f   : > { %v2345_v47 = vpop.eup %2344  ;;  %v866_v48 = vadd.f32 1.0, %v2343_v46  ;;  %v1881_v46 = vld [vmem:[%s3432_s3 + $0x4] ss:$8 sm:$0x3] }
 0x130   : > { %v867_v49 = vadd.f32 1.0, %v2345_v47  ;;  %v917_v55 = vrot.slane %v1881_v46, %v3170_v20 }
 0x131   : > { %2350 = vrcp.f32 %v866_v48 }
 0x132   : > { %2352 = vrcp.f32 %v867_v49 }
 0x137   : > { %v2347_v50 = vpop.eup %2346 }
 0x138   : > { %v2349_v51 = vpop.eup %2348  ;;  %v609_v52 = vmul.f32 %v2347_v50, %v593_v29  ;;  %v623_v29 = vld [vmem:[%s3432_s3] ss:$8 sm:$0x3] }
 0x139   : > { %v610_v53 = vmul.f32 %v2349_v51, %v595_v32  ;;  %v632_v47 = vrot.slane %v623_v29, %v3170_v20  ;;  %v1880_v51 = vld [vmem:[%s3432_s3 + $0x1] ss:$8 sm:$0x3] }
 0x13a   : > { %v613_v54 = vrot.slane %v609_v52, 7  ;;  %v913_v52 = vrot.slane %v1881_v46, %v3165_v18 }
 0x13b   : > { %v2351_v57 = vpop.eup %2350  ;;  %v614_v58 = vrot.slane %v610_v53, 7 }
 0x13c   : > { %v2353_v61 = vpop.eup %2352  ;;  %617 = vst [vmem:[#allocation2] sm:$0xfe] %v613_v54  ;;  %619 = vst [vmem:[#allocation2 + $0x10] sm:$0x1] %v613_v54  ;;  %v872_v62 = vmul.f32 %v2351_v57, %v856_v38  ;;  %v628_v38 = vrot.slane %v623_v29, %v3165_v18 }
 0x13d   : > { %618 = vst [vmem:[#allocation2 + $0x8] sm:$0xfe] %v614_v58  ;;  %620 = vst [vmem:[#allocation2 + $0x18] sm:$0x1] %v614_v58  ;;  %v873_v63 = vmul.f32 %v2353_v61, %v858_v8 }
 0x13e   : > { %v876_v0 = vrot.slane %v872_v62, 7  ;;  %v1882_v54 = vld [vmem:[%s3432_s3 + $0x7] ss:$8 sm:$0x3] }
 0x13f   : > { %v877_v1 = vrot.slane %v873_v63, 7 }
 0x143   : > { %v621_v2 = vld [vmem:[#allocation2] sm:$0xff]  ;;  %v641_v5 = vld [vmem:[#allocation2 + $0x10] sm:$0x1] }
 0x144   : > { %v639_v3 = vld [vmem:[#allocation2] sm:$0xfe]  ;;  %v677_v7 = vld [vmem:[#allocation2 + $0x10] sm:$0x3]  ;;  %v622_v9 = vld [vmem:[#allocation2 + $0x8] sm:$0xff]  ;;  %v658_v30 = vmul.f32 %v649_v25, %v641_v5  ;;  %v635_v56 = vmul.f32 %v628_v38, %v621_v2  ;;  %v948_v2 = vrot.slane %v1882_v54, %v3165_v18 }
 0x145   : > { %v675_v6 = vld [vmem:[#allocation2] sm:$0xfc]  ;;  %882 = vst [vmem:[#allocation2 + $0x10] sm:$0x1] %v876_v0  ;;  %v640_v10 = vld [vmem:[#allocation2 + $0x8] sm:$0xfe]  ;;  %v656_v28 = vmul.f32 %v649_v25, %v639_v3  ;;  %v694_v45 = vmul.f32 %v685_v33, %v677_v7  ;;  %v636_v60 = vmul.f32 %v632_v47, %v622_v9  ;;  %v892_v3 = vrot.slane %v1880_v51, %v3165_v18 }
 0x146   : > { %880 = vst [vmem:[#allocation2] sm:$0xfe] %v876_v0  ;;  %v642_v11 = vld [vmem:[#allocation2 + $0x18] sm:$0x1]  ;;  %v676_v12 = vld [vmem:[#allocation2 + $0x8] sm:$0xfc]  ;;  %v657_v31 = vmul.f32 %v653_v26, %v640_v10  ;;  %v692_v44 = vmul.f32 %v685_v33, %v675_v6 }
 0x147   : > { %v678_v13 = vld [vmem:[#allocation2 + $0x18] sm:$0x3]  ;;  %881 = vst [vmem:[#allocation2 + $0x8] sm:$0xfe] %v877_v1  ;;  %v659_v32 = vmul.f32 %v653_v26, %v642_v11  ;;  %v665_v39 = vrot.slane %v656_v28, 1  ;;  %v666_v40 = vrot.slane %v658_v30, 1  ;;  %v693_v48 = vmul.f32 %v689_v35, %v676_v12 }
 0x148   : > { %883 = vst [vmem:[#allocation2 + $0x18] sm:$0x1] %v877_v1  ;;  %v668_v41 = vrot.slane %v657_v31, 1  ;;  %v695_v49 = vmul.f32 %v689_v35, %v678_v13  ;;  %v701_v57 = vrot.slane %v692_v44, 2  ;;  %v702_v58 = vrot.slane %v694_v45, 2 }
 0x149   : > { %v669_v42 = vrot.slane %v659_v32, 1  ;;  %v667_v50 = vsel %vm664_vm1, %v665_v39, %v666_v40  ;;  %v704_v62 = vrot.slane %v693_v48, 2  ;;  %v896_v11 = vrot.slane %v1880_v51, %v3170_v20  ;;  %v1950_v44 = vld [vmem:[%s3432_s3 + $0x2] ss:$8 sm:$0x3] }
 0x14a   : > { %v705_v63 = vrot.slane %v695_v49, 2  ;;  %v673_v1 = vadd.f32 %v667_v50, %v635_v56  ;;  %v1952_v51 = vld [vmem:[%s3432_s3 + $0x10] ss:$8 sm:$0x3]  ;;  %v1158_v56 = vrot.slane %v1950_v44, %v3170_v20 }
 0x14b   : > { %v670_v53 = vsel %vm664_vm1, %v668_v41, %v669_v42 }
 0x14c   : > { %v905_v61 = vld [vmem:[#allocation2 + $0x10] sm:$0x1]  ;;  %v674_v5 = vadd.f32 %v670_v53, %v636_v60  ;;  %v1154_v53 = vrot.slane %v1950_v44, %v3165_v18  ;;  %v1214_v60 = vrot.slane %v1952_v51, %v3170_v20 }
 0x14d   : > { %v903_v59 = vld [vmem:[#allocation2] sm:$0xfe]  ;;  %v922_v12 = vmul.f32 %v913_v52, %v905_v61  ;;  %v940_v14 = vld [vmem:[#allocation2 + $0x10] sm:$0x3]  ;;  %v1210_v61 = vrot.slane %v1952_v51, %v3165_v18 }
 0x14e   : > { %v904_v0 = vld [vmem:[#allocation2 + $0x8] sm:$0xfe]  ;;  %v884_v7 = vld [vmem:[#allocation2] sm:$0xff]  ;;  %v920_v10 = vmul.f32 %v913_v52, %v903_v59  ;;  %v957_v32 = vmul.f32 %v948_v2, %v940_v14 }
 0x14f   : > { %v906_v6 = vld [vmem:[#allocation2 + $0x18] sm:$0x1]  ;;  %v885_v13 = vld [vmem:[#allocation2 + $0x8] sm:$0xff]  ;;  %v921_v9 = vmul.f32 %v917_v55, %v904_v0  ;;  %v899_v25 = vmul.f32 %v892_v3, %v884_v7 }
 0x150   : > { %v941_v27 = vld [vmem:[#allocation2 + $0x18] sm:$0x3]  ;;  %v939_v28 = vld [vmem:[#allocation2 + $0x8] sm:$0xfc]  ;;  %v928_v30 = vrot.slane %v920_v10, 1  ;;  %v900_v31 = vmul.f32 %v896_v11, %v885_v13  ;;  %v964_v47 = vrot.slane %v957_v32, 2 }
 0x15b   : > { %v1117_v17 = vpop.f32.mrb[2].mxu0 }
 0x15c   : > { %v3197_v19 = vadd.f32 %v1117_v17, %v1044_v15  ;;  %v1119_v21 = vpop.f32.mrb[3].mxu0  ;;  %v703_v15 = vsel %vm700_vm2, %v701_v57, %v702_v58  ;;  %v923_v17 = vmul.f32 %v917_v55, %v906_v6 }
 0x15d   : > { %v3199_v22 = vadd.f32 %v1119_v21, %v1048_v16  ;;  %v706_v16 = vsel %vm700_vm2, %v704_v62, %v705_v63  ;;  %v952_v21 = vrot.slane %v1882_v54, %v3170_v20  ;;  %v709_v4 = vadd.f32 %v703_v15, %v673_v1 }
 0x15e   : > { %v1948_v23 = vmul.f32 -1.442695, %v3197_v19  ;;  %v710_v26 = vadd.f32 %v706_v16, %v674_v5 }
 0x15f   : > { %v1949_v24 = vmul.f32 -1.442695, %v3199_v22  ;;  %v956_v40 = vmul.f32 %v952_v21, %v939_v28  ;;  %v958_v41 = vmul.f32 %v952_v21, %v941_v27  ;;  %v1235_v28 = vld [vmem:[%s3433_s4] sm:$0x3] }
 0x160   : > { %2354 = vpow2.f32 %v1948_v23  ;;  %v938_v23 = vld [vmem:[#allocation2] sm:$0xfc] }
 0x161   : > { %2356 = vpow2.f32 %v1949_v24  ;;  %v955_v38 = vmul.f32 %v948_v2, %v938_v23  ;;  %v966_v49 = vrot.slane %v956_v40, 2  ;;  %v967_v50 = vrot.slane %v958_v41, 2 }
 0x163   : > { %v963_v46 = vrot.slane %v955_v38, 2  ;;  %v968_v59 = vsel %vm700_vm2, %v966_v49, %v967_v50  ;;  %v1244_v38 = vrot.slane %v1235_v28, %v3170_v20 }
 0x165   : > { %v965_v58 = vsel %vm700_vm2, %v963_v46, %v964_v47 }
 0x16a   : > { %v2355_v34 = vpop.eup %2354 }
 0x16b   : > { %v2357_v37 = vpop.eup %2356  ;;  %v1128_v8 = vadd.f32 1.0, %v2355_v34  ;;  %v929_v34 = vrot.slane %v922_v12, 1 }
 0x16c   : > { %v1129_v43 = vadd.f32 1.0, %v2357_v37  ;;  %v931_v37 = vrot.slane %v921_v9, 1 }
 0x16d   : > { %2358 = vrcp.f32 %v1128_v8  ;;  %v932_v8 = vrot.slane %v923_v17, 1  ;;  %v930_v45 = vsel %vm664_vm1, %v928_v30, %v929_v34 }
 0x16e   : > { %2360 = vrcp.f32 %v1129_v43  ;;  %v901_v43 = vadd.f32 %v899_v25, %v709_v4 }
 0x16f   : > { %v933_v48 = vsel %vm664_vm1, %v931_v37, %v932_v8 }
 0x170   : > { %v936_v52 = vadd.f32 %v930_v45, %v901_v43  ;;  %v1240_v43 = vrot.slane %v1235_v28, %v3165_v18 }
 0x172   : > { %v971_v6 = vadd.f32 %v965_v58, %v936_v52 }
 0x177   : > { %v2359_v24 = vpop.eup %2358 }
 0x178   : > { %v2361_v29 = vpop.eup %2360  ;;  %v1134_v33 = vmul.f32 %v2359_v24, %v3197_v19  ;;  %v902_v19 = vadd.f32 %v900_v31, %v710_v26 }
 0x179   : > { %v1135_v35 = vmul.f32 %v2361_v29, %v3199_v22  ;;  %v1951_v22 = vld [vmem:[%s3432_s3 + $0x5] ss:$8 sm:$0x3] }
 0x17a   : > { %v1138_v39 = vrot.slane %v1134_v33, 7  ;;  %v1175_v54 = vrot.slane %v1951_v22, %v3165_v18  ;;  %v937_v55 = vadd.f32 %v933_v48, %v902_v19  ;;  %v1179_v57 = vrot.slane %v1951_v22, %v3170_v20 }
 0x17b   : > { %v1139_v42 = vrot.slane %v1135_v35, 7 }
 0x17c   : > { %1144 = vst [vmem:[#allocation2 + $0x10] sm:$0x1] %v1138_v39  ;;  %1142 = vst [vmem:[#allocation2] sm:$0xfe] %v1138_v39  ;;  %v972_v2 = vadd.f32 %v968_v59, %v937_v55 }
 0x17d   : > { %1145 = vst [vmem:[#allocation2 + $0x18] sm:$0x1] %v1139_v42  ;;  %1143 = vst [vmem:[#allocation2 + $0x8] sm:$0xfe] %v1139_v42 }
 0x183   : > { %v1146_v62 = vld [vmem:[#allocation2] sm:$0xff]  ;;  %v1167_v0 = vld [vmem:[#allocation2 + $0x10] sm:$0x1] }
 0x184   : > { %v1165_v63 = vld [vmem:[#allocation2] sm:$0xfe]  ;;  %v1147_v1 = vld [vmem:[#allocation2 + $0x8] sm:$0xff]  ;;  %v1168_v5 = vld [vmem:[#allocation2 + $0x18] sm:$0x1]  ;;  %v1161_v7 = vmul.f32 %v1154_v53, %v1146_v62  ;;  %v1184_v11 = vmul.f32 %v1175_v54, %v1167_v0 }
 0x185   : > { %v1166_v3 = vld [vmem:[#allocation2 + $0x8] sm:$0xfe]  ;;  %v1182_v10 = vmul.f32 %v1175_v54, %v1165_v63  ;;  %v1162_v12 = vmul.f32 %v1158_v56, %v1147_v1  ;;  %v1185_v14 = vmul.f32 %v1179_v57, %v1168_v5  ;;  %v1203_v15 = vld [vmem:[#allocation2 + $0x18] sm:$0x3]  ;;  %v1200_v16 = vld [vmem:[#allocation2] sm:$0xfc] }
 0x186   : > { %v1183_v13 = vmul.f32 %v1179_v57, %v1166_v3  ;;  %v1201_v9 = vld [vmem:[#allocation2 + $0x8] sm:$0xfc]  ;;  %v1220_v21 = vmul.f32 %v1214_v60, %v1203_v15  ;;  %v1163_v23 = vadd.f32 %v1161_v7, %v971_v6  ;;  %v1202_v4 = vld [vmem:[#allocation2 + $0x10] sm:$0x3]  ;;  %v1191_v29 = vrot.slane %v1184_v11, 1  ;;  %v1381_v6 = vld [vmem:[%s3435_s6 + $0x18] sm:$0xff] }
 0x187   : > { %v1218_v17 = vmul.f32 %v1214_v60, %v1201_v9  ;;  %v1190_v24 = vrot.slane %v1182_v10, 1  ;;  %v1164_v25 = vadd.f32 %v1162_v12, %v972_v2  ;;  %v1194_v27 = vrot.slane %v1185_v14, 1  ;;  %v1380_v5 = vld [vmem:[%s3435_s6 + $0x10] sm:$0xff]  ;;  %v1382_v14 = vld [vmem:[%s3436_s7] sm:$0x1] }
 0x188   : > { %v1193_v26 = vrot.slane %v1183_v13, 1  ;;  %v1229_v31 = vrot.slane %v1220_v21, 2  ;;  %v1217_v32 = vmul.f32 %v1210_v61, %v1200_v16  ;;  %v1219_v33 = vmul.f32 %v1210_v61, %v1202_v4  ;;  %v1464_v13 = vld [vmem:[%s3437_s8] sm:$0xff] }
 0x189   : > { %v1228_v30 = vrot.slane %v1218_v17, 2  ;;  %v1192_v35 = vsel %vm664_vm1, %v1190_v24, %v1191_v29  ;;  %v2285_v7 = vpack.c.bf16 %v1381_v6, %v1380_v5  ;;  %v1548_v29 = vld [vmem:[%s3439_s10 + $0x10] sm:$0xff]  ;;  %v1663_v5 = vld [vmem:[%s3440_s11 + $0xc8] sm:$0xff] }
 0x18a   : > { %v1195_v34 = vsel %vm664_vm1, %v1193_v26, %v1194_v27  ;;  %v1198_v39 = vadd.f32 %v1192_v35, %v1163_v23  ;;  %v1225_v8 = vrot.slane %v1217_v32, 2  ;;  %v1226_v41 = vrot.slane %v1219_v33, 2  ;;  %v1549_v26 = vld [vmem:[%s3439_s10 + $0x18] sm:$0xff]  ;;  %v1546_v27 = vld [vmem:[%s3439_s10] sm:$0xff] }
 0x18b   : > { %v1199_v37 = vadd.f32 %v1195_v34, %v1164_v25  ;;  %v1230_v40 = vsel %vm700_vm2, %v1228_v30, %v1229_v31  ;;  %2286 = vmatpush3.bf16.msra.mxu0 %v2285_v7  ;;  %v1547_v25 = vld [vmem:[%s3439_s10 + $0x8] sm:$0xff]  ;;  %v1553_v30 = vld [vmem:[%s3439_s10 + $0x38] sm:$0xff]  ;;  %v2289_v31 = vpack.c.bf16 %v1548_v29, %v1546_v27  ;;  %v1550_v33 = vld [vmem:[%s3439_s10 + $0x20] sm:$0xff] }
 0x18c   : > { %v1227_v44 = vsel %vm700_vm2, %v1225_v8, %v1226_v41  ;;  %v2287_v28 = vpack.c.bf16 %v1549_v26, %v1547_v25  ;;  %v1552_v34 = vld [vmem:[%s3439_s10 + $0x30] sm:$0xff]  ;;  %v1465_v8 = vld [vmem:[%s3438_s9] sm:$0x1]  ;;  %v1669_v27 = vld [vmem:[%s3440_s11 + $0xf8] sm:$0xff] }
 0x18d   : > { %v1234_v42 = vadd.f32 %v1230_v40, %v1199_v37  ;;  %v1233_v19 = vadd.f32 %v1227_v44, %v1198_v39  ;;  %v2293_v35 = vpack.c.bf16 %v1552_v34, %v1550_v33  ;;  %v1654_v37 = vld [vmem:[%s3440_s11 + $0x80] sm:$0xff]  ;;  %v1668_v26 = vld [vmem:[%s3440_s11 + $0xf0] sm:$0xff] }
 0x18e   : > { %v2323_v29 = vpack.c.bf16 %v1669_v27, %v1668_v26 }
 0x18f   : > { %v1248_v45 = vadd.f32 %v1244_v38, %v1234_v42  ;;  %v1247_v46 = vadd.f32 %v1240_v43, %v1233_v19  ;;  %v1655_v38 = vld [vmem:[%s3440_s11 + $0x88] sm:$0xff]  ;;  %v1638_v19 = vld [vmem:[%s3440_s11] sm:$0xff] }
 0x190   : > { %v2295_v39 = vpack.c.bf16 %v1655_v38, %v1654_v37 }
 0x191   : > { %v1954_v22 = vmul.f32 -1.442695, %v1248_v45  ;;  %v1953_v47 = vmul.f32 -1.442695, %v1247_v46 }
 0x193   : > { %2362 = vpow2.f32 %v1954_v22  ;;  %v1639_v22 = vld [vmem:[%s3440_s11 + $0x8] sm:$0xff] }
 0x194   : > { %2364 = vpow2.f32 %v1953_v47  ;;  %v1657_v47 = vld [vmem:[%s3440_s11 + $0x98] sm:$0xff] }
 0x19d   : > { %v2363_v48 = vpop.eup %2362 }
 0x19e   : > { %v1256_v49 = vadd.f32 1.0, %v2363_v48  ;;  %v2365_v20 = vpop.eup %2364  ;;  %v2297_v48 = vpack.c.bf16 %v1639_v22, %v1638_v19 }
 0x19f   : > { %v1255_v50 = vadd.f32 1.0, %v2365_v20  ;;  %v1640_v20 = vld [vmem:[%s3440_s11 + $0x10] sm:$0xff] }
 0x1a0   : > { %2366 = vrcp.f32 %v1256_v49 }
 0x1a1   : > { %2368 = vrcp.f32 %v1255_v50  ;;  %v1641_v50 = vld [vmem:[%s3440_s11 + $0x18] sm:$0xff] }
 0x1aa   : > { %v2367_v51 = vpop.eup %2366 }
 0x1ab   : > { %v3267_v52 = vmul.f32 %v2367_v51, %v1248_v45  ;;  %v2369_v53 = vpop.eup %2368 }
 0x1ac   : > { %v3270_v55 = vmul.f32 %v2369_v53, %v1247_v46  ;;  %v1656_v46 = vld [vmem:[%s3440_s11 + $0x90] sm:$0xff]  ;;  %v1658_v53 = vld [vmem:[%s3440_s11 + $0xa0] sm:$0xff] }
 0x1ad   : > { %v1269_v54 = vrot.slane %v3267_v52, 4  ;;  %v2299_v49 = vpack.c.bf16 %v1657_v47, %v1656_v46 }
 0x1ae   : > { %v1263_v57 = vrot.slane %v3270_v55, 4 }
 0x1af   : > { %v1270_v56 = vadd.f32 %v1269_v54, %v3267_v52  ;;  %v1659_v54 = vld [vmem:[%s3440_s11 + $0xa8] sm:$0xff] }
 0x1b0   : > { %v1264_v59 = vadd.f32 %v1263_v57, %v3270_v55  ;;  %v2303_v57 = vpack.c.bf16 %v1659_v54, %v1658_v53 }
 0x1b1   : > { %v1271_v58 = vrot.slane %v1270_v56, 2 }
 0x1b2   : > { %v1265_v61 = vrot.slane %v1264_v59, 2 }
 0x1b3   : > { %v1272_v60 = vadd.f32 %v1271_v58, %v1270_v56  ;;  %v2301_v56 = vpack.c.bf16 %v1641_v50, %v1640_v20  ;;  %v1642_v58 = vld [vmem:[%s3440_s11 + $0x20] sm:$0xff] }
 0x1b4   : > { %v1266_v63 = vadd.f32 %v1265_v61, %v1264_v59  ;;  %v1643_v59 = vld [vmem:[%s3440_s11 + $0x28] sm:$0xff]  ;;  %v1661_v61 = vld [vmem:[%s3440_s11 + $0xb8] sm:$0xff] }
 0x1b5   : > { %v1273_v62 = vrot.slane %v1272_v60, 1 }
 0x1b6   : > { %v1267_v1 = vrot.slane %v1266_v63, 1 }
 0x1b7   : > { %v1274_v0 = vadd.f32 %v1273_v62, %v1272_v60  ;;  %v1660_v60 = vld [vmem:[%s3440_s11 + $0xb0] sm:$0xff]  ;;  %v2305_v62 = vpack.c.bf16 %v1643_v59, %v1642_v58 }
 0x1b8   : > { %v1268_v3 = vadd.f32 %v1267_v1, %v1266_v63  ;;  %v2307_v63 = vpack.c.bf16 %v1661_v61, %v1660_v60  ;;  %v1645_v1 = vld [vmem:[%s3440_s11 + $0x38] sm:$0xff] }
 0x1b9   : > { %1371 = vmatprep.mubr.f32.mxu1 %v1274_v0  ;;  %v1644_v0 = vld [vmem:[%s3440_s11 + $0x30] sm:$0xff] }
 0x1ba   : > { %1372 = vmatmul.mubr.f32.vlgmr.msra.gmra.mrb[2].mxu1 %v1268_v3  ;;  %v1662_v3 = vld [vmem:[%s3440_s11 + $0xc0] sm:$0xff]  ;;  %v2309_v6 = vpack.c.bf16 %v1645_v1, %v1644_v0 }
 0x1bb   : > { %2054 = vmatprep.mubr.msk.f32.mxu1 %vm2388_vm3, %v2386_v36  ;;  %2053 = vmatpush3.msra.mxu1 %v1464_v13  ;;  %v2311_v7 = vpack.c.bf16 %v1663_v5, %v1662_v3 }
 0x1bc   : > { %2288 = vmatprep.subr.bf16.mxu1 %v2287_v28  ;;  %v1652_v28 = vld [vmem:[%s3440_s11 + $0x70] sm:$0xff] }
 0x28d   : > { %v1996_v10 = vpop.f32.mrb[2].mxu1 }
 0x28e   : > { %v1997_v11 = vpop.f32.mrb[3].mxu1 }
 0x28f   : > { %v1998_v2 = vadd.f32 %v1997_v11, %v1996_v10  ;;  %v1646_v10 = vld [vmem:[%s3440_s11 + $0x40] sm:$0xff]  ;;  %v1647_v11 = vld [vmem:[%s3440_s11 + $0x48] sm:$0xff] }
 0x290   : > { %v2313_v13 = vpack.c.bf16 %v1647_v11, %v1646_v10 }
 0x291   : > { %v1377_v12 = vmul.f32 0.015625, %v1998_v2  ;;  %v1664_v2 = vld [vmem:[%s3440_s11 + $0xd0] sm:$0xff] }
 0x293   : > { %2050 = vmatmul.mubr.msk.f32.vlgmr.msra.gmra.mrb[4].mxu0 %vm1383_vm4, %v1377_v12  ;;  %v1665_v12 = vld [vmem:[%s3440_s11 + $0xd8] sm:$0xff] }
 0x366   : > { %v1453_v9 = vpop.f32.mrb[4].mxu0 }
 0x367   : > { %v1454_v15 = vadd.f32 %v1453_v9, %v1382_v14  ;;  %v2051_v16 = vpop.f32.mrb[5].mxu0  ;;  %v2315_v14 = vpack.c.bf16 %v1665_v12, %v1664_v2  ;;  %v1648_v9 = vld [vmem:[%s3440_s11 + $0x50] sm:$0xff] }
 0x368   : > { %v1666_v16 = vld [vmem:[%s3440_s11 + $0xe0] sm:$0xff] }
 0x369   : > { %v1956_v17 = vmul.f32 -1.442695, %v1454_v15 }
 0x36b   : > { %2370 = vpow2.f32 %v1956_v17  ;;  %v1667_v17 = vld [vmem:[%s3440_s11 + $0xe8] sm:$0xff] }
 0x375   : > { %v2371_v21 = vpop.eup %2370 }
 0x376   : > { %v1460_v23 = vadd.f32 1.0, %v2371_v21 }
 0x378   : > { %2372 = vrcp.f32 %v1460_v23  ;;  %v2319_v23 = vpack.c.bf16 %v1667_v17, %v1666_v16 }
 0x382   : > { %v2373_v24 = vpop.eup %2372 }
 0x383   : > { %v1463_v4 = vmul.f32 %v2373_v24, %v1454_v15  ;;  %v1649_v15 = vld [vmem:[%s3440_s11 + $0x58] sm:$0xff]  ;;  %v1650_v24 = vld [vmem:[%s3440_s11 + $0x60] sm:$0xff] }
 0x384   : > { %v2317_v21 = vpack.c.bf16 %v1649_v15, %v1648_v9 }
 0x385   : > { %2055 = vmatmul.mubr.msk.f32.vlgmr.msra.gmra.mrb[4].mxu1 %vm1466_vm5, %v1463_v4  ;;  %v1651_v4 = vld [vmem:[%s3440_s11 + $0x68] sm:$0xff] }
 0x386   : > { %1621 = vmatprep.mubr.f32.mxu1 %v2386_v36  ;;  %v1551_v36 = vld [vmem:[%s3439_s10 + $0x28] sm:$0xff]  ;;  %2290 = vmatpush1.bf16.msra.mxu1 %v2289_v31  ;;  %v2321_v25 = vpack.c.bf16 %v1651_v4, %v1650_v24 }
 0x387   : > { %v2291_v32 = vpack.c.bf16 %v1553_v30, %v1551_v36  ;;  %v1653_v36 = vld [vmem:[%s3440_s11 + $0x78] sm:$0xff] }
 0x388   : > { %v2325_v30 = vpack.c.bf16 %v1653_v36, %v1652_v28 }
 0x389   : > { %2292 = vmatprep.subr.bf16.mxu1 %v2291_v32 }
 0x38a   : > { %2294 = vmatpush1.bf16.msra.mxu1 %v2293_v35 }
 0x38b   : > { %2296 = vmatprep.subr.bf16.mxu1 %v2295_v39  ;;  %v1960_v39 = vld [vmem:[%s3441_s12] ss:$0 sm:$0xff] }
 0x458   : > { %v1536_v40 = vpop.f32.mrb[4].mxu1 }
 0x459   : > { %v1537_v41 = vadd.f32 %v1536_v40, %v1465_v8  ;;  %v2056_v42 = vpop.f32.mrb[5].mxu1 }
 0x45b   : > { %v1958_v43 = vmul.f32 -1.442695, %v1537_v41 }
 0x45d   : > { %2374 = vpow2.f32 %v1958_v43 }
 0x467   : > { %v2375_v44 = vpop.eup %2374 }
 0x468   : > { %v1543_v45 = vadd.f32 1.0, %v2375_v44 }
 0x46a   : > { %2376 = vrcp.f32 %v1543_v45 }
 0x474   : > { %v2377_v51 = vpop.eup %2376 }
 0x475   : > { %1959 = vmatmul.mubr.msk.f32.vlgmr.msra.gmra.mrb[6].mxu1 %vm1383_vm4, %v2377_v51 }
 0x476   : > { %2298 = vmatpush3.bf16.msra.mxu1 %v2297_v48 }
 0x477   : > { %2300 = vmatprep.subr.bf16.mxu1 %v2299_v49 }
 0x47a   : > { %2302 = vmatpush3.bf16.msra.mxu1 %v2301_v56 }
 0x47b   : > { %2304 = vmatprep.subr.bf16.mxu1 %v2303_v57 }
 0x47e   : > { %2306 = vmatpush3.bf16.msra.mxu1 %v2305_v62 }
 0x47f   : > { %2308 = vmatprep.subr.bf16.mxu1 %v2307_v63 }
 0x482   : > { %2310 = vmatpush3.bf16.msra.mxu1 %v2309_v6 }
 0x483   : > { %2312 = vmatprep.subr.bf16.mxu1 %v2311_v7 }
 0x486   : > { %2314 = vmatpush3.bf16.msra.mxu1 %v2313_v13 }
 0x487   : > { %2316 = vmatprep.subr.bf16.mxu1 %v2315_v14 }
 0x48a   : > { %2318 = vmatpush3.bf16.msra.mxu1 %v2317_v21 }
 0x48b   : > { %2320 = vmatprep.subr.bf16.mxu1 %v2319_v23 }
 0x48e   : > { %2322 = vmatpush3.bf16.msra.mxu1 %v2321_v25 }
 0x48f   : > { %2324 = vmatprep.subr.bf16.mxu1 %v2323_v29 }
 0x492   : > { %2326 = vmatpush3.bf16.msra.mxu1 %v2325_v30 }
 0x548   : > { %v1623_v31 = vpop.f32.mrb[6].mxu1 }
 0x549   : > { %v1631_v32 = vrot.slane %v1623_v31, %v3165_v18  ;;  %v1625_v33 = vpop.f32.mrb[7].mxu1 }
 0x54a   : > { %v1635_v34 = vrot.slane %v1625_v33, %v3165_v18 }
 0x54b   : > { %v1636_v37 = vmul.f32 %v1631_v32, %v3270_v55 }
 0x54c   : > { %v1637_v35 = vmul.f32 %v1635_v34, %v3267_v52 }
 0x54e   : > { %1741 = vmatprep.mubr.f32.mxu1 %v1637_v35 }
 0x54f   : > { %1742 = vmatmul.mubr.f32.vlgmr.msra.gmra.mrb[8].mxu1 %v1636_v37 }
 0x622   : > { %v2038_v38 = vpop.f32.mrb[8].mxu1 }
 0x623   : > { %v2039_v8 = vpop.f32.mrb[9].mxu1 }
 0x624   : > { %v2040_v40 = vadd.f32 %v2039_v8, %v2038_v38 }
 0x626   : > { %v1744_v41 = vadd.f32 %v2040_v40, %v1960_v39 }
 0x628   : > { %1747 = vst [vmem:[%s438_s28] sm:$0xff] %v1744_v41 }
 0x629 PF: > { %s23_s25 = sadd.s32 1, %s2384_s25  }
 0x62a   : > { %p20_p4 = scmp.ge.s32.totalorder %s23_s25, 4  }
 0x62c   :  { %22 = sbr.rel (!%p20_p4) target bundleno = 1 (0x1), region = 115 }

</bundles_post_ra>
